<compile_context>
chip_gen: v6e
topology: v6e:2x2x1
jax: 0.10.0
libtpu: 0.0.40
codegen_flags: <defaults>
</compile_context>

<pallas_src>
import jax
import jax.numpy as jnp
from jax import lax
from jax.experimental import pallas as pl
from jax.experimental.pallas import tpu as pltpu


def _lstm_gen_kernel(x_ref, w1_ref, b1_ref, whh1_ref, wih2_ref, whh2_ref, b2_ref,
                     wblk_ref, bout_ref, h0_ref, c0_ref, out_ref):
    S = x_ref.shape[1]
    H = whh1_ref.shape[0]

    xs = x_ref[...]               # (B, S)     raw input (n_features == 1)
    w1 = w1_ref[...]              # (1, 4H)    layer-1 input-weight row (gate order i,f,o,g)
    b1 = b1_ref[...]              # (1, 4H)    b_ih1 + b_hh1, reordered
    whh1 = whh1_ref[...]          # (H, 4H)    W_hh1^T, reordered columns
    wih2 = wih2_ref[...]          # (H, 4H)    W_ih2^T, reordered columns
    whh2 = whh2_ref[...]          # (H, 4H)    W_hh2^T, reordered columns
    b2 = b2_ref[...]              # (1, 4H)    b_ih2 + b_hh2, reordered

    # Initial state from the user-supplied hidden tuple (layer 0 / layer 1).
    h1 = h0_ref[0]
    c1 = c0_ref[0]
    h2 = h0_ref[1]
    c2 = c0_ref[1]

    def lstm_cell(gates, c_prev):
        # Gate columns are pre-packed (i, f, o, g): one sigmoid covers [0, 3H),
        # one tanh covers [3H, 4H) -> 2 transcendental issues per cell instead of 4.
        sig = jax.nn.sigmoid(gates[:, :3 * H])
        i = sig[:, 0 * H:1 * H]
        f = sig[:, 1 * H:2 * H]
        o = sig[:, 2 * H:3 * H]
        g = jnp.tanh(gates[:, 3 * H:])
        c_new = f * c_prev + i * g
        h_new = o * jnp.tanh(c_new)
        return h_new, c_new

    h2_steps = []
    # Fully-unrolled time loop (S is small and static).
    # TODO(synk): for S >> 64 switch to lax.fori_loop(unroll=4..8) + VMEM scratch for h2
    #             to bound live vregs / code size; not needed at these shapes.
    for t in range(S):
        # ---- layer 1 ----
        # Input projection (scalar-per-batch * weight row + folded bias); independent
        # of the recurrent state, so it hides under the layer-1 matmul.
        g1_in = xs[:, t:t + 1] * w1 + b1                                   # (B, 4H)
        gates1 = g1_in + jnp.dot(h1, whh1, preferred_element_type=jnp.float32)
        h1, c1 = lstm_cell(gates1, c1)

        # ---- layer 2: two independent dots, no lane-concat on the serial chain ----
        gates2 = (jnp.dot(h2, whh2, preferred_element_type=jnp.float32) + b2
                  + jnp.dot(h1, wih2, preferred_element_type=jnp.float32))
        h2, c2 = lstm_cell(gates2, c2)
        h2_steps.append(h2)

    # ---- output Linear(hidden, 1), hoisted off the recurrence path ----
    # Lane-concat the per-step h2 states into (B, S*H) and multiply by the precomputed
    # block-diagonal (S*H, S) output weight: the result lands directly as (B, S)
    # (no in-kernel transpose, no wrapper transpose), followed by a single store.
    h2_cat = jnp.concatenate(h2_steps, axis=-1)                            # (B, S*H)
    out_ref[...] = (jnp.dot(h2_cat, wblk_ref[...],
                            preferred_element_type=jnp.float32)
                    + bout_ref[...])


def prepare_generator_params(params, hidden_dim, seq_length):
    """One-time, pure-weight repacking (NOT per forward call):
    gate reorder (i,f,g,o)->(i,f,o,g), transposes, bias folding, block-diag W_out."""
    H = hidden_dim
    (W_ih1, W_hh1, b_ih1, b_hh1,
     W_ih2, W_hh2, b_ih2, b_hh2,
     W_out, b_out) = params

    def reorder(a):
        # PyTorch packs gates (i, f, g, o) along the leading 4H axis; repack (i, f, o, g).
        i, f, g, o = a[0:H], a[H:2 * H], a[2 * H:3 * H], a[3 * H:4 * H]
        return jnp.concatenate([i, f, o, g], axis=0)

    w1 = reorder(W_ih1)[:, 0].reshape(1, 4 * H)        # layer-1 input row (n_features == 1)
    b1 = reorder(b_ih1 + b_hh1).reshape(1, 4 * H)      # folded layer-1 bias
    whh1 = reorder(W_hh1).T                            # (H, 4H)
    wih2 = reorder(W_ih2).T                            # (H, 4H)
    whh2 = reorder(W_hh2).T                            # (H, 4H)
    b2 = reorder(b_ih2 + b_hh2).reshape(1, 4 * H)      # folded layer-2 bias
    # Block-diagonal output weight: out[b, s] = sum_h h2_s[b, h] * W_out[0, h].
    wblk = jnp.kron(jnp.eye(seq_length, dtype=W_out.dtype), W_out.reshape(H, 1))  # (S*H, S)
    bout = b_out.reshape(1, 1)
    return (w1, b1, whh1, wih2, whh2, b2, wblk, bout)


def generator_forward_pallas(x, hidden, prepped):
    """x: (batch, seq) or (batch, seq, 1) f32.  hidden = (h0, c0), each (2, batch, hid).
    Returns (batch, seq) f32, matching PyTorch Generator.forward for batch > 1."""
    h0, c0 = hidden
    (w1, b1, whh1, wih2, whh2, b2, wblk, bout) = prepped
    B = x.shape[0]
    S = wblk.shape[1]
    # Mirrors the module's own `x.view(batch, seq, 1)` flexibility; free if already 2-D.
    x2d = x.reshape(B, S)

    vmem = lambda: pl.BlockSpec(memory_space=pltpu.MemorySpace.VMEM)
    # NOTE: PyTorch `x.squeeze()` with batch == 1 would return shape (seq,); this
    # wrapper always returns (batch, seq).
    return pl.pallas_call(
        _lstm_gen_kernel,
        out_shape=jax.ShapeDtypeStruct((B, S), jnp.float32),
        in_specs=[vmem() for _ in range(11)],
        out_specs=vmem(),
    )(x2d, w1, b1, whh1, wih2, whh2, b2, wblk, bout, h0, c0)


def generator_forward_ref(x, hidden, params):
    """Pure-JAX reference (semantically identical to torch.nn.LSTM + Linear)."""
    (W_ih1, W_hh1, b_ih1, b_hh1,
     W_ih2, W_hh2, b_ih2, b_hh2,
     W_out, b_out) = params
    h0, c0 = hidden

    def cell(x_t, h, c, W_ih, W_hh, b_ih, b_hh):
        gates = x_t @ W_ih.T + b_ih + h @ W_hh.T + b_hh
        i, f, g, o = jnp.split(gates, 4, axis=-1)
        c_new = jax.nn.sigmoid(f) * c + jax.nn.sigmoid(i) * jnp.tanh(g)
        h_new = jax.nn.sigmoid(o) * jnp.tanh(c_new)
        return h_new, c_new

    def step(carry, x_t):
        h1, c1, h2, c2 = carry
        h1, c1 = cell(x_t, h1, c1, W_ih1, W_hh1, b_ih1, b_hh1)
        h2, c2 = cell(h1, h2, c2, W_ih2, W_hh2, b_ih2, b_hh2)
        y = h2 @ W_out.T + b_out
        return (h1, c1, h2, c2), y

    xs = jnp.transpose(x, (1, 0, 2))                     # (S, B, 1)
    _, ys = lax.scan(step, (h0[0], c0[0], h0[1], c0[1]), xs)
    return jnp.transpose(ys[..., 0], (1, 0))             # (B, S)


def init_params(key, hidden_dim, n_features=1):
    H = hidden_dim
    ks = jax.random.split(key, 10)
    scale = 0.1
    W_ih1 = scale * jax.random.normal(ks[0], (4 * H, n_features), jnp.float32)
    W_hh1 = scale * jax.random.normal(ks[1], (4 * H, H), jnp.float32)
    b_ih1 = scale * jax.random.normal(ks[2], (4 * H,), jnp.float32)
    b_hh1 = scale * jax.random.normal(ks[3], (4 * H,), jnp.float32)
    W_ih2 = scale * jax.random.normal(ks[4], (4 * H, H), jnp.float32)
    W_hh2 = scale * jax.random.normal(ks[5], (4 * H, H), jnp.float32)
    b_ih2 = scale * jax.random.normal(ks[6], (4 * H,), jnp.float32)
    b_hh2 = scale * jax.random.normal(ks[7], (4 * H,), jnp.float32)
    W_out = scale * jax.random.normal(ks[8], (1, H), jnp.float32)
    b_out = scale * jax.random.normal(ks[9], (1,), jnp.float32)
    return (W_ih1, W_hh1, b_ih1, b_hh1,
            W_ih2, W_hh2, b_ih2, b_hh2,
            W_out, b_out)


if __name__ == "__main__":
    # Small shapes consistent with the module: n_features=1, hidden_dim=32,
    # num_layers=2, unidirectional.  Batch=8 to fill the sublane width.
    batch, seq, hidden_dim, num_layers = 8, 8, 32, 2

    key = jax.random.PRNGKey(0)
    k_x, k_p, k_h, k_c = jax.random.split(key, 4)

    params = init_params(k_p, hidden_dim)
    prepped = prepare_generator_params(params, hidden_dim, seq)   # once, not per call

    x = jax.random.normal(k_x, (batch, seq, 1), jnp.float32)
    # Module's init_hidden() gives zeros; use small nonzero state here so the test
    # also exercises the hidden-state plumbing (same hidden fed to kernel and ref).
    h0 = 0.1 * jax.random.normal(k_h, (num_layers, batch, hidden_dim), jnp.float32)
    c0 = 0.1 * jax.random.normal(k_c, (num_layers, batch, hidden_dim), jnp.float32)
    hidden = (h0, c0)

    out = generator_forward_pallas(x, hidden, prepped)
    out = jax.block_until_ready(out)

    ref = generator_forward_ref(x, hidden, params)
    assert out.shape == (batch, seq)
    assert jnp.allclose(out, ref, atol=1e-4, rtol=1e-4), "Pallas output != reference"

    print("KERNEL_OK")
</pallas_src>

<mosaic_0001>
module attributes {stable_mosaic.version = 11 : i64} {
  func.func @_lstm_gen_kernel(%arg0: memref<8x8xf32, #tpu.memory_space<vmem>>, %arg1: memref<1x128xf32, #tpu.memory_space<vmem>>, %arg2: memref<1x128xf32, #tpu.memory_space<vmem>>, %arg3: memref<32x128xf32, #tpu.memory_space<vmem>>, %arg4: memref<32x128xf32, #tpu.memory_space<vmem>>, %arg5: memref<32x128xf32, #tpu.memory_space<vmem>>, %arg6: memref<1x128xf32, #tpu.memory_space<vmem>>, %arg7: memref<256x8xf32, #tpu.memory_space<vmem>>, %arg8: memref<1x1xf32, #tpu.memory_space<vmem>>, %arg9: memref<2x8x32xf32, #tpu.memory_space<vmem>>, %arg10: memref<2x8x32xf32, #tpu.memory_space<vmem>>, %arg11: memref<8x8xf32, #tpu.memory_space<vmem>>) attributes {dimension_semantics = [], scalar_prefetch = 0 : i64, scratch_operands = 0 : i64, tpu.core_type = #tpu.core_type<tc>} {
    %c0 = arith.constant 0 : index
    %c0_0 = arith.constant 0 : index
    %0 = vector.load %arg0[%c0, %c0_0] : memref<8x8xf32, #tpu.memory_space<vmem>>, vector<8x8xf32>
    %c0_1 = arith.constant 0 : index
    %c0_2 = arith.constant 0 : index
    %1 = vector.load %arg1[%c0_1, %c0_2] : memref<1x128xf32, #tpu.memory_space<vmem>>, vector<1x128xf32>
    %c0_3 = arith.constant 0 : index
    %c0_4 = arith.constant 0 : index
    %2 = vector.load %arg2[%c0_3, %c0_4] : memref<1x128xf32, #tpu.memory_space<vmem>>, vector<1x128xf32>
    %c0_5 = arith.constant 0 : index
    %c0_6 = arith.constant 0 : index
    %3 = vector.load %arg3[%c0_5, %c0_6] : memref<32x128xf32, #tpu.memory_space<vmem>>, vector<32x128xf32>
    %c0_7 = arith.constant 0 : index
    %c0_8 = arith.constant 0 : index
    %4 = vector.load %arg4[%c0_7, %c0_8] : memref<32x128xf32, #tpu.memory_space<vmem>>, vector<32x128xf32>
    %c0_9 = arith.constant 0 : index
    %c0_10 = arith.constant 0 : index
    %5 = vector.load %arg5[%c0_9, %c0_10] : memref<32x128xf32, #tpu.memory_space<vmem>>, vector<32x128xf32>
    %c0_11 = arith.constant 0 : index
    %c0_12 = arith.constant 0 : index
    %6 = vector.load %arg6[%c0_11, %c0_12] : memref<1x128xf32, #tpu.memory_space<vmem>>, vector<1x128xf32>
    %c0_13 = arith.constant 0 : index
    %c0_14 = arith.constant 0 : index
    %c0_15 = arith.constant 0 : index
    %7 = vector.load %arg9[%c0_13, %c0_14, %c0_15] : memref<2x8x32xf32, #tpu.memory_space<vmem>>, vector<1x8x32xf32>
    %8 = vector.shape_cast %7 : vector<1x8x32xf32> to vector<8x32xf32>
    %c0_16 = arith.constant 0 : index
    %c0_17 = arith.constant 0 : index
    %c0_18 = arith.constant 0 : index
    %9 = vector.load %arg10[%c0_16, %c0_17, %c0_18] : memref<2x8x32xf32, #tpu.memory_space<vmem>>, vector<1x8x32xf32>
    %10 = vector.shape_cast %9 : vector<1x8x32xf32> to vector<8x32xf32>
    %c1 = arith.constant 1 : index
    %c0_19 = arith.constant 0 : index
    %c0_20 = arith.constant 0 : index
    %11 = vector.load %arg9[%c1, %c0_19, %c0_20] : memref<2x8x32xf32, #tpu.memory_space<vmem>>, vector<1x8x32xf32>
    %12 = vector.shape_cast %11 : vector<1x8x32xf32> to vector<8x32xf32>
    %c1_21 = arith.constant 1 : index
    %c0_22 = arith.constant 0 : index
    %c0_23 = arith.constant 0 : index
    %13 = vector.load %arg10[%c1_21, %c0_22, %c0_23] : memref<2x8x32xf32, #tpu.memory_space<vmem>>, vector<1x8x32xf32>
    %14 = vector.shape_cast %13 : vector<1x8x32xf32> to vector<8x32xf32>
    %15 = vector.extract_strided_slice %0 {offsets = [0, 0], sizes = [8, 1], strides = [1, 1]} : vector<8x8xf32> to vector<8x1xf32>
    %16 = vector.broadcast %15 : vector<8x1xf32> to vector<8x128xf32>
    %17 = vector.broadcast %1 : vector<1x128xf32> to vector<8x128xf32>
    %18 = arith.mulf %16, %17 : vector<8x128xf32>
    %19 = vector.broadcast %2 : vector<1x128xf32> to vector<8x128xf32>
    %20 = arith.addf %18, %19 : vector<8x128xf32>
    %cst = arith.constant dense<0.000000e+00> : vector<8x128xf32>
    %21 = tpu.matmul %8, %3, %cst {dimension_numbers = #tpu.dot_dimension_numbers<[1], [0], [0], [1], [0, 0, 1, 1], [], []>} : vector<8x32xf32>, vector<32x128xf32>, vector<8x128xf32> -> vector<8x128xf32>
    %22 = arith.addf %20, %21 : vector<8x128xf32>
    %23 = vector.extract_strided_slice %22 {offsets = [0, 0], sizes = [8, 96], strides = [1, 1]} : vector<8x128xf32> to vector<8x96xf32>
    %24 = arith.negf %23 : vector<8x96xf32>
    %25 = math.exp %24 : vector<8x96xf32>
    %cst_24 = arith.constant 1.000000e+00 : f32
    %26 = vector.broadcast %cst_24 : f32 to vector<8x96xf32>
    %27 = arith.addf %26, %25 : vector<8x96xf32>
    %28 = arith.divf %26, %27 : vector<8x96xf32>
    %29 = vector.extract_strided_slice %28 {offsets = [0, 0], sizes = [8, 32], strides = [1, 1]} : vector<8x96xf32> to vector<8x32xf32>
    %30 = vector.extract_strided_slice %28 {offsets = [0, 32], sizes = [8, 32], strides = [1, 1]} : vector<8x96xf32> to vector<8x32xf32>
    %31 = vector.extract_strided_slice %28 {offsets = [0, 64], sizes = [8, 32], strides = [1, 1]} : vector<8x96xf32> to vector<8x32xf32>
    %32 = vector.extract_strided_slice %22 {offsets = [0, 96], sizes = [8, 32], strides = [1, 1]} : vector<8x128xf32> to vector<8x32xf32>
    %33 = math.tanh %32 : vector<8x32xf32>
    %34 = arith.mulf %30, %10 : vector<8x32xf32>
    %35 = arith.mulf %29, %33 : vector<8x32xf32>
    %36 = arith.addf %34, %35 : vector<8x32xf32>
    %37 = math.tanh %36 : vector<8x32xf32>
    %38 = arith.mulf %31, %37 : vector<8x32xf32>
    %cst_25 = arith.constant dense<0.000000e+00> : vector<8x128xf32>
    %39 = tpu.matmul %12, %5, %cst_25 {dimension_numbers = #tpu.dot_dimension_numbers<[1], [0], [0], [1], [0, 0, 1, 1], [], []>} : vector<8x32xf32>, vector<32x128xf32>, vector<8x128xf32> -> vector<8x128xf32>
    %40 = vector.broadcast %6 : vector<1x128xf32> to vector<8x128xf32>
    %41 = arith.addf %39, %40 : vector<8x128xf32>
    %cst_26 = arith.constant dense<0.000000e+00> : vector<8x128xf32>
    %42 = tpu.matmul %38, %4, %cst_26 {dimension_numbers = #tpu.dot_dimension_numbers<[1], [0], [0], [1], [0, 0, 1, 1], [], []>} : vector<8x32xf32>, vector<32x128xf32>, vector<8x128xf32> -> vector<8x128xf32>
    %43 = arith.addf %41, %42 : vector<8x128xf32>
    %44 = vector.extract_strided_slice %43 {offsets = [0, 0], sizes = [8, 96], strides = [1, 1]} : vector<8x128xf32> to vector<8x96xf32>
    %45 = arith.negf %44 : vector<8x96xf32>
    %46 = math.exp %45 : vector<8x96xf32>
    %cst_27 = arith.constant 1.000000e+00 : f32
    %47 = vector.broadcast %cst_27 : f32 to vector<8x96xf32>
    %48 = arith.addf %47, %46 : vector<8x96xf32>
    %49 = arith.divf %47, %48 : vector<8x96xf32>
    %50 = vector.extract_strided_slice %49 {offsets = [0, 0], sizes = [8, 32], strides = [1, 1]} : vector<8x96xf32> to vector<8x32xf32>
    %51 = vector.extract_strided_slice %49 {offsets = [0, 32], sizes = [8, 32], strides = [1, 1]} : vector<8x96xf32> to vector<8x32xf32>
    %52 = vector.extract_strided_slice %49 {offsets = [0, 64], sizes = [8, 32], strides = [1, 1]} : vector<8x96xf32> to vector<8x32xf32>
    %53 = vector.extract_strided_slice %43 {offsets = [0, 96], sizes = [8, 32], strides = [1, 1]} : vector<8x128xf32> to vector<8x32xf32>
    %54 = math.tanh %53 : vector<8x32xf32>
    %55 = arith.mulf %51, %14 : vector<8x32xf32>
    %56 = arith.mulf %50, %54 : vector<8x32xf32>
    %57 = arith.addf %55, %56 : vector<8x32xf32>
    %58 = math.tanh %57 : vector<8x32xf32>
    %59 = arith.mulf %52, %58 : vector<8x32xf32>
    %60 = vector.extract_strided_slice %0 {offsets = [0, 1], sizes = [8, 1], strides = [1, 1]} : vector<8x8xf32> to vector<8x1xf32>
    %61 = vector.broadcast %60 : vector<8x1xf32> to vector<8x128xf32>
    %62 = vector.broadcast %1 : vector<1x128xf32> to vector<8x128xf32>
    %63 = arith.mulf %61, %62 : vector<8x128xf32>
    %64 = vector.broadcast %2 : vector<1x128xf32> to vector<8x128xf32>
    %65 = arith.addf %63, %64 : vector<8x128xf32>
    %cst_28 = arith.constant dense<0.000000e+00> : vector<8x128xf32>
    %66 = tpu.matmul %38, %3, %cst_28 {dimension_numbers = #tpu.dot_dimension_numbers<[1], [0], [0], [1], [0, 0, 1, 1], [], []>} : vector<8x32xf32>, vector<32x128xf32>, vector<8x128xf32> -> vector<8x128xf32>
    %67 = arith.addf %65, %66 : vector<8x128xf32>
    %68 = vector.extract_strided_slice %67 {offsets = [0, 0], sizes = [8, 96], strides = [1, 1]} : vector<8x128xf32> to vector<8x96xf32>
    %69 = arith.negf %68 : vector<8x96xf32>
    %70 = math.exp %69 : vector<8x96xf32>
    %cst_29 = arith.constant 1.000000e+00 : f32
    %71 = vector.broadcast %cst_29 : f32 to vector<8x96xf32>
    %72 = arith.addf %71, %70 : vector<8x96xf32>
    %73 = arith.divf %71, %72 : vector<8x96xf32>
    %74 = vector.extract_strided_slice %73 {offsets = [0, 0], sizes = [8, 32], strides = [1, 1]} : vector<8x96xf32> to vector<8x32xf32>
    %75 = vector.extract_strided_slice %73 {offsets = [0, 32], sizes = [8, 32], strides = [1, 1]} : vector<8x96xf32> to vector<8x32xf32>
    %76 = vector.extract_strided_slice %73 {offsets = [0, 64], sizes = [8, 32], strides = [1, 1]} : vector<8x96xf32> to vector<8x32xf32>
    %77 = vector.extract_strided_slice %67 {offsets = [0, 96], sizes = [8, 32], strides = [1, 1]} : vector<8x128xf32> to vector<8x32xf32>
    %78 = math.tanh %77 : vector<8x32xf32>
    %79 = arith.mulf %75, %36 : vector<8x32xf32>
    %80 = arith.mulf %74, %78 : vector<8x32xf32>
    %81 = arith.addf %79, %80 : vector<8x32xf32>
    %82 = math.tanh %81 : vector<8x32xf32>
    %83 = arith.mulf %76, %82 : vector<8x32xf32>
    %cst_30 = arith.constant dense<0.000000e+00> : vector<8x128xf32>
    %84 = tpu.matmul %59, %5, %cst_30 {dimension_numbers = #tpu.dot_dimension_numbers<[1], [0], [0], [1], [0, 0, 1, 1], [], []>} : vector<8x32xf32>, vector<32x128xf32>, vector<8x128xf32> -> vector<8x128xf32>
    %85 = vector.broadcast %6 : vector<1x128xf32> to vector<8x128xf32>
    %86 = arith.addf %84, %85 : vector<8x128xf32>
    %cst_31 = arith.constant dense<0.000000e+00> : vector<8x128xf32>
    %87 = tpu.matmul %83, %4, %cst_31 {dimension_numbers = #tpu.dot_dimension_numbers<[1], [0], [0], [1], [0, 0, 1, 1], [], []>} : vector<8x32xf32>, vector<32x128xf32>, vector<8x128xf32> -> vector<8x128xf32>
    %88 = arith.addf %86, %87 : vector<8x128xf32>
    %89 = vector.extract_strided_slice %88 {offsets = [0, 0], sizes = [8, 96], strides = [1, 1]} : vector<8x128xf32> to vector<8x96xf32>
    %90 = arith.negf %89 : vector<8x96xf32>
    %91 = math.exp %90 : vector<8x96xf32>
    %cst_32 = arith.constant 1.000000e+00 : f32
    %92 = vector.broadcast %cst_32 : f32 to vector<8x96xf32>
    %93 = arith.addf %92, %91 : vector<8x96xf32>
    %94 = arith.divf %92, %93 : vector<8x96xf32>
    %95 = vector.extract_strided_slice %94 {offsets = [0, 0], sizes = [8, 32], strides = [1, 1]} : vector<8x96xf32> to vector<8x32xf32>
    %96 = vector.extract_strided_slice %94 {offsets = [0, 32], sizes = [8, 32], strides = [1, 1]} : vector<8x96xf32> to vector<8x32xf32>
    %97 = vector.extract_strided_slice %94 {offsets = [0, 64], sizes = [8, 32], strides = [1, 1]} : vector<8x96xf32> to vector<8x32xf32>
    %98 = vector.extract_strided_slice %88 {offsets = [0, 96], sizes = [8, 32], strides = [1, 1]} : vector<8x128xf32> to vector<8x32xf32>
    %99 = math.tanh %98 : vector<8x32xf32>
    %100 = arith.mulf %96, %57 : vector<8x32xf32>
    %101 = arith.mulf %95, %99 : vector<8x32xf32>
    %102 = arith.addf %100, %101 : vector<8x32xf32>
    %103 = math.tanh %102 : vector<8x32xf32>
    %104 = arith.mulf %97, %103 : vector<8x32xf32>
    %105 = vector.extract_strided_slice %0 {offsets = [0, 2], sizes = [8, 1], strides = [1, 1]} : vector<8x8xf32> to vector<8x1xf32>
    %106 = vector.broadcast %105 : vector<8x1xf32> to vector<8x128xf32>
    %107 = vector.broadcast %1 : vector<1x128xf32> to vector<8x128xf32>
    %108 = arith.mulf %106, %107 : vector<8x128xf32>
    %109 = vector.broadcast %2 : vector<1x128xf32> to vector<8x128xf32>
    %110 = arith.addf %108, %109 : vector<8x128xf32>
    %cst_33 = arith.constant dense<0.000000e+00> : vector<8x128xf32>
    %111 = tpu.matmul %83, %3, %cst_33 {dimension_numbers = #tpu.dot_dimension_numbers<[1], [0], [0], [1], [0, 0, 1, 1], [], []>} : vector<8x32xf32>, vector<32x128xf32>, vector<8x128xf32> -> vector<8x128xf32>
    %112 = arith.addf %110, %111 : vector<8x128xf32>
    %113 = vector.extract_strided_slice %112 {offsets = [0, 0], sizes = [8, 96], strides = [1, 1]} : vector<8x128xf32> to vector<8x96xf32>
    %114 = arith.negf %113 : vector<8x96xf32>
    %115 = math.exp %114 : vector<8x96xf32>
    %cst_34 = arith.constant 1.000000e+00 : f32
    %116 = vector.broadcast %cst_34 : f32 to vector<8x96xf32>
    %117 = arith.addf %116, %115 : vector<8x96xf32>
    %118 = arith.divf %116, %117 : vector<8x96xf32>
    %119 = vector.extract_strided_slice %118 {offsets = [0, 0], sizes = [8, 32], strides = [1, 1]} : vector<8x96xf32> to vector<8x32xf32>
    %120 = vector.extract_strided_slice %118 {offsets = [0, 32], sizes = [8, 32], strides = [1, 1]} : vector<8x96xf32> to vector<8x32xf32>
    %121 = vector.extract_strided_slice %118 {offsets = [0, 64], sizes = [8, 32], strides = [1, 1]} : vector<8x96xf32> to vector<8x32xf32>
    %122 = vector.extract_strided_slice %112 {offsets = [0, 96], sizes = [8, 32], strides = [1, 1]} : vector<8x128xf32> to vector<8x32xf32>
    %123 = math.tanh %122 : vector<8x32xf32>
    %124 = arith.mulf %120, %81 : vector<8x32xf32>
    %125 = arith.mulf %119, %123 : vector<8x32xf32>
    %126 = arith.addf %124, %125 : vector<8x32xf32>
    %127 = math.tanh %126 : vector<8x32xf32>
    %128 = arith.mulf %121, %127 : vector<8x32xf32>
    %cst_35 = arith.constant dense<0.000000e+00> : vector<8x128xf32>
    %129 = tpu.matmul %104, %5, %cst_35 {dimension_numbers = #tpu.dot_dimension_numbers<[1], [0], [0], [1], [0, 0, 1, 1], [], []>} : vector<8x32xf32>, vector<32x128xf32>, vector<8x128xf32> -> vector<8x128xf32>
    %130 = vector.broadcast %6 : vector<1x128xf32> to vector<8x128xf32>
    %131 = arith.addf %129, %130 : vector<8x128xf32>
    %cst_36 = arith.constant dense<0.000000e+00> : vector<8x128xf32>
    %132 = tpu.matmul %128, %4, %cst_36 {dimension_numbers = #tpu.dot_dimension_numbers<[1], [0], [0], [1], [0, 0, 1, 1], [], []>} : vector<8x32xf32>, vector<32x128xf32>, vector<8x128xf32> -> vector<8x128xf32>
    %133 = arith.addf %131, %132 : vector<8x128xf32>
    %134 = vector.extract_strided_slice %133 {offsets = [0, 0], sizes = [8, 96], strides = [1, 1]} : vector<8x128xf32> to vector<8x96xf32>
    %135 = arith.negf %134 : vector<8x96xf32>
    %136 = math.exp %135 : vector<8x96xf32>
    %cst_37 = arith.constant 1.000000e+00 : f32
    %137 = vector.broadcast %cst_37 : f32 to vector<8x96xf32>
    %138 = arith.addf %137, %136 : vector<8x96xf32>
    %139 = arith.divf %137, %138 : vector<8x96xf32>
    %140 = vector.extract_strided_slice %139 {offsets = [0, 0], sizes = [8, 32], strides = [1, 1]} : vector<8x96xf32> to vector<8x32xf32>
    %141 = vector.extract_strided_slice %139 {offsets = [0, 32], sizes = [8, 32], strides = [1, 1]} : vector<8x96xf32> to vector<8x32xf32>
    %142 = vector.extract_strided_slice %139 {offsets = [0, 64], sizes = [8, 32], strides = [1, 1]} : vector<8x96xf32> to vector<8x32xf32>
    %143 = vector.extract_strided_slice %133 {offsets = [0, 96], sizes = [8, 32], strides = [1, 1]} : vector<8x128xf32> to vector<8x32xf32>
    %144 = math.tanh %143 : vector<8x32xf32>
    %145 = arith.mulf %141, %102 : vector<8x32xf32>
    %146 = arith.mulf %140, %144 : vector<8x32xf32>
    %147 = arith.addf %145, %146 : vector<8x32xf32>
    %148 = math.tanh %147 : vector<8x32xf32>
    %149 = arith.mulf %142, %148 : vector<8x32xf32>
    %150 = vector.extract_strided_slice %0 {offsets = [0, 3], sizes = [8, 1], strides = [1, 1]} : vector<8x8xf32> to vector<8x1xf32>
    %151 = vector.broadcast %150 : vector<8x1xf32> to vector<8x128xf32>
    %152 = vector.broadcast %1 : vector<1x128xf32> to vector<8x128xf32>
    %153 = arith.mulf %151, %152 : vector<8x128xf32>
    %154 = vector.broadcast %2 : vector<1x128xf32> to vector<8x128xf32>
    %155 = arith.addf %153, %154 : vector<8x128xf32>
    %cst_38 = arith.constant dense<0.000000e+00> : vector<8x128xf32>
    %156 = tpu.matmul %128, %3, %cst_38 {dimension_numbers = #tpu.dot_dimension_numbers<[1], [0], [0], [1], [0, 0, 1, 1], [], []>} : vector<8x32xf32>, vector<32x128xf32>, vector<8x128xf32> -> vector<8x128xf32>
    %157 = arith.addf %155, %156 : vector<8x128xf32>
    %158 = vector.extract_strided_slice %157 {offsets = [0, 0], sizes = [8, 96], strides = [1, 1]} : vector<8x128xf32> to vector<8x96xf32>
    %159 = arith.negf %158 : vector<8x96xf32>
    %160 = math.exp %159 : vector<8x96xf32>
    %cst_39 = arith.constant 1.000000e+00 : f32
    %161 = vector.broadcast %cst_39 : f32 to vector<8x96xf32>
    %162 = arith.addf %161, %160 : vector<8x96xf32>
    %163 = arith.divf %161, %162 : vector<8x96xf32>
    %164 = vector.extract_strided_slice %163 {offsets = [0, 0], sizes = [8, 32], strides = [1, 1]} : vector<8x96xf32> to vector<8x32xf32>
    %165 = vector.extract_strided_slice %163 {offsets = [0, 32], sizes = [8, 32], strides = [1, 1]} : vector<8x96xf32> to vector<8x32xf32>
    %166 = vector.extract_strided_slice %163 {offsets = [0, 64], sizes = [8, 32], strides = [1, 1]} : vector<8x96xf32> to vector<8x32xf32>
    %167 = vector.extract_strided_slice %157 {offsets = [0, 96], sizes = [8, 32], strides = [1, 1]} : vector<8x128xf32> to vector<8x32xf32>
    %168 = math.tanh %167 : vector<8x32xf32>
    %169 = arith.mulf %165, %126 : vector<8x32xf32>
    %170 = arith.mulf %164, %168 : vector<8x32xf32>
    %171 = arith.addf %169, %170 : vector<8x32xf32>
    %172 = math.tanh %171 : vector<8x32xf32>
    %173 = arith.mulf %166, %172 : vector<8x32xf32>
    %cst_40 = arith.constant dense<0.000000e+00> : vector<8x128xf32>
    %174 = tpu.matmul %149, %5, %cst_40 {dimension_numbers = #tpu.dot_dimension_numbers<[1], [0], [0], [1], [0, 0, 1, 1], [], []>} : vector<8x32xf32>, vector<32x128xf32>, vector<8x128xf32> -> vector<8x128xf32>
    %175 = vector.broadcast %6 : vector<1x128xf32> to vector<8x128xf32>
    %176 = arith.addf %174, %175 : vector<8x128xf32>
    %cst_41 = arith.constant dense<0.000000e+00> : vector<8x128xf32>
    %177 = tpu.matmul %173, %4, %cst_41 {dimension_numbers = #tpu.dot_dimension_numbers<[1], [0], [0], [1], [0, 0, 1, 1], [], []>} : vector<8x32xf32>, vector<32x128xf32>, vector<8x128xf32> -> vector<8x128xf32>
    %178 = arith.addf %176, %177 : vector<8x128xf32>
    %179 = vector.extract_strided_slice %178 {offsets = [0, 0], sizes = [8, 96], strides = [1, 1]} : vector<8x128xf32> to vector<8x96xf32>
    %180 = arith.negf %179 : vector<8x96xf32>
    %181 = math.exp %180 : vector<8x96xf32>
    %cst_42 = arith.constant 1.000000e+00 : f32
    %182 = vector.broadcast %cst_42 : f32 to vector<8x96xf32>
    %183 = arith.addf %182, %181 : vector<8x96xf32>
    %184 = arith.divf %182, %183 : vector<8x96xf32>
    %185 = vector.extract_strided_slice %184 {offsets = [0, 0], sizes = [8, 32], strides = [1, 1]} : vector<8x96xf32> to vector<8x32xf32>
    %186 = vector.extract_strided_slice %184 {offsets = [0, 32], sizes = [8, 32], strides = [1, 1]} : vector<8x96xf32> to vector<8x32xf32>
    %187 = vector.extract_strided_slice %184 {offsets = [0, 64], sizes = [8, 32], strides = [1, 1]} : vector<8x96xf32> to vector<8x32xf32>
    %188 = vector.extract_strided_slice %178 {offsets = [0, 96], sizes = [8, 32], strides = [1, 1]} : vector<8x128xf32> to vector<8x32xf32>
    %189 = math.tanh %188 : vector<8x32xf32>
    %190 = arith.mulf %186, %147 : vector<8x32xf32>
    %191 = arith.mulf %185, %189 : vector<8x32xf32>
    %192 = arith.addf %190, %191 : vector<8x32xf32>
    %193 = math.tanh %192 : vector<8x32xf32>
    %194 = arith.mulf %187, %193 : vector<8x32xf32>
    %195 = vector.extract_strided_slice %0 {offsets = [0, 4], sizes = [8, 1], strides = [1, 1]} : vector<8x8xf32> to vector<8x1xf32>
    %196 = vector.broadcast %195 : vector<8x1xf32> to vector<8x128xf32>
    %197 = vector.broadcast %1 : vector<1x128xf32> to vector<8x128xf32>
    %198 = arith.mulf %196, %197 : vector<8x128xf32>
    %199 = vector.broadcast %2 : vector<1x128xf32> to vector<8x128xf32>
    %200 = arith.addf %198, %199 : vector<8x128xf32>
    %cst_43 = arith.constant dense<0.000000e+00> : vector<8x128xf32>
    %201 = tpu.matmul %173, %3, %cst_43 {dimension_numbers = #tpu.dot_dimension_numbers<[1], [0], [0], [1], [0, 0, 1, 1], [], []>} : vector<8x32xf32>, vector<32x128xf32>, vector<8x128xf32> -> vector<8x128xf32>
    %202 = arith.addf %200, %201 : vector<8x128xf32>
    %203 = vector.extract_strided_slice %202 {offsets = [0, 0], sizes = [8, 96], strides = [1, 1]} : vector<8x128xf32> to vector<8x96xf32>
    %204 = arith.negf %203 : vector<8x96xf32>
    %205 = math.exp %204 : vector<8x96xf32>
    %cst_44 = arith.constant 1.000000e+00 : f32
    %206 = vector.broadcast %cst_44 : f32 to vector<8x96xf32>
    %207 = arith.addf %206, %205 : vector<8x96xf32>
    %208 = arith.divf %206, %207 : vector<8x96xf32>
    %209 = vector.extract_strided_slice %208 {offsets = [0, 0], sizes = [8, 32], strides = [1, 1]} : vector<8x96xf32> to vector<8x32xf32>
    %210 = vector.extract_strided_slice %208 {offsets = [0, 32], sizes = [8, 32], strides = [1, 1]} : vector<8x96xf32> to vector<8x32xf32>
    %211 = vector.extract_strided_slice %208 {offsets = [0, 64], sizes = [8, 32], strides = [1, 1]} : vector<8x96xf32> to vector<8x32xf32>
    %212 = vector.extract_strided_slice %202 {offsets = [0, 96], sizes = [8, 32], strides = [1, 1]} : vector<8x128xf32> to vector<8x32xf32>
    %213 = math.tanh %212 : vector<8x32xf32>
    %214 = arith.mulf %210, %171 : vector<8x32xf32>
    %215 = arith.mulf %209, %213 : vector<8x32xf32>
    %216 = arith.addf %214, %215 : vector<8x32xf32>
    %217 = math.tanh %216 : vector<8x32xf32>
    %218 = arith.mulf %211, %217 : vector<8x32xf32>
    %cst_45 = arith.constant dense<0.000000e+00> : vector<8x128xf32>
    %219 = tpu.matmul %194, %5, %cst_45 {dimension_numbers = #tpu.dot_dimension_numbers<[1], [0], [0], [1], [0, 0, 1, 1], [], []>} : vector<8x32xf32>, vector<32x128xf32>, vector<8x128xf32> -> vector<8x128xf32>
    %220 = vector.broadcast %6 : vector<1x128xf32> to vector<8x128xf32>
    %221 = arith.addf %219, %220 : vector<8x128xf32>
    %cst_46 = arith.constant dense<0.000000e+00> : vector<8x128xf32>
    %222 = tpu.matmul %218, %4, %cst_46 {dimension_numbers = #tpu.dot_dimension_numbers<[1], [0], [0], [1], [0, 0, 1, 1], [], []>} : vector<8x32xf32>, vector<32x128xf32>, vector<8x128xf32> -> vector<8x128xf32>
    %223 = arith.addf %221, %222 : vector<8x128xf32>
    %224 = vector.extract_strided_slice %223 {offsets = [0, 0], sizes = [8, 96], strides = [1, 1]} : vector<8x128xf32> to vector<8x96xf32>
    %225 = arith.negf %224 : vector<8x96xf32>
    %226 = math.exp %225 : vector<8x96xf32>
    %cst_47 = arith.constant 1.000000e+00 : f32
    %227 = vector.broadcast %cst_47 : f32 to vector<8x96xf32>
    %228 = arith.addf %227, %226 : vector<8x96xf32>
    %229 = arith.divf %227, %228 : vector<8x96xf32>
    %230 = vector.extract_strided_slice %229 {offsets = [0, 0], sizes = [8, 32], strides = [1, 1]} : vector<8x96xf32> to vector<8x32xf32>
    %231 = vector.extract_strided_slice %229 {offsets = [0, 32], sizes = [8, 32], strides = [1, 1]} : vector<8x96xf32> to vector<8x32xf32>
    %232 = vector.extract_strided_slice %229 {offsets = [0, 64], sizes = [8, 32], strides = [1, 1]} : vector<8x96xf32> to vector<8x32xf32>
    %233 = vector.extract_strided_slice %223 {offsets = [0, 96], sizes = [8, 32], strides = [1, 1]} : vector<8x128xf32> to vector<8x32xf32>
    %234 = math.tanh %233 : vector<8x32xf32>
    %235 = arith.mulf %231, %192 : vector<8x32xf32>
    %236 = arith.mulf %230, %234 : vector<8x32xf32>
    %237 = arith.addf %235, %236 : vector<8x32xf32>
    %238 = math.tanh %237 : vector<8x32xf32>
    %239 = arith.mulf %232, %238 : vector<8x32xf32>
    %240 = vector.extract_strided_slice %0 {offsets = [0, 5], sizes = [8, 1], strides = [1, 1]} : vector<8x8xf32> to vector<8x1xf32>
    %241 = vector.broadcast %240 : vector<8x1xf32> to vector<8x128xf32>
    %242 = vector.broadcast %1 : vector<1x128xf32> to vector<8x128xf32>
    %243 = arith.mulf %241, %242 : vector<8x128xf32>
    %244 = vector.broadcast %2 : vector<1x128xf32> to vector<8x128xf32>
    %245 = arith.addf %243, %244 : vector<8x128xf32>
    %cst_48 = arith.constant dense<0.000000e+00> : vector<8x128xf32>
    %246 = tpu.matmul %218, %3, %cst_48 {dimension_numbers = #tpu.dot_dimension_numbers<[1], [0], [0], [1], [0, 0, 1, 1], [], []>} : vector<8x32xf32>, vector<32x128xf32>, vector<8x128xf32> -> vector<8x128xf32>
    %247 = arith.addf %245, %246 : vector<8x128xf32>
    %248 = vector.extract_strided_slice %247 {offsets = [0, 0], sizes = [8, 96], strides = [1, 1]} : vector<8x128xf32> to vector<8x96xf32>
    %249 = arith.negf %248 : vector<8x96xf32>
    %250 = math.exp %249 : vector<8x96xf32>
    %cst_49 = arith.constant 1.000000e+00 : f32
    %251 = vector.broadcast %cst_49 : f32 to vector<8x96xf32>
    %252 = arith.addf %251, %250 : vector<8x96xf32>
    %253 = arith.divf %251, %252 : vector<8x96xf32>
    %254 = vector.extract_strided_slice %253 {offsets = [0, 0], sizes = [8, 32], strides = [1, 1]} : vector<8x96xf32> to vector<8x32xf32>
    %255 = vector.extract_strided_slice %253 {offsets = [0, 32], sizes = [8, 32], strides = [1, 1]} : vector<8x96xf32> to vector<8x32xf32>
    %256 = vector.extract_strided_slice %253 {offsets = [0, 64], sizes = [8, 32], strides = [1, 1]} : vector<8x96xf32> to vector<8x32xf32>
    %257 = vector.extract_strided_slice %247 {offsets = [0, 96], sizes = [8, 32], strides = [1, 1]} : vector<8x128xf32> to vector<8x32xf32>
    %258 = math.tanh %257 : vector<8x32xf32>
    %259 = arith.mulf %255, %216 : vector<8x32xf32>
    %260 = arith.mulf %254, %258 : vector<8x32xf32>
    %261 = arith.addf %259, %260 : vector<8x32xf32>
    %262 = math.tanh %261 : vector<8x32xf32>
    %263 = arith.mulf %256, %262 : vector<8x32xf32>
    %cst_50 = arith.constant dense<0.000000e+00> : vector<8x128xf32>
    %264 = tpu.matmul %239, %5, %cst_50 {dimension_numbers = #tpu.dot_dimension_numbers<[1], [0], [0], [1], [0, 0, 1, 1], [], []>} : vector<8x32xf32>, vector<32x128xf32>, vector<8x128xf32> -> vector<8x128xf32>
    %265 = vector.broadcast %6 : vector<1x128xf32> to vector<8x128xf32>
    %266 = arith.addf %264, %265 : vector<8x128xf32>
    %cst_51 = arith.constant dense<0.000000e+00> : vector<8x128xf32>
    %267 = tpu.matmul %263, %4, %cst_51 {dimension_numbers = #tpu.dot_dimension_numbers<[1], [0], [0], [1], [0, 0, 1, 1], [], []>} : vector<8x32xf32>, vector<32x128xf32>, vector<8x128xf32> -> vector<8x128xf32>
    %268 = arith.addf %266, %267 : vector<8x128xf32>
    %269 = vector.extract_strided_slice %268 {offsets = [0, 0], sizes = [8, 96], strides = [1, 1]} : vector<8x128xf32> to vector<8x96xf32>
    %270 = arith.negf %269 : vector<8x96xf32>
    %271 = math.exp %270 : vector<8x96xf32>
    %cst_52 = arith.constant 1.000000e+00 : f32
    %272 = vector.broadcast %cst_52 : f32 to vector<8x96xf32>
    %273 = arith.addf %272, %271 : vector<8x96xf32>
    %274 = arith.divf %272, %273 : vector<8x96xf32>
    %275 = vector.extract_strided_slice %274 {offsets = [0, 0], sizes = [8, 32], strides = [1, 1]} : vector<8x96xf32> to vector<8x32xf32>
    %276 = vector.extract_strided_slice %274 {offsets = [0, 32], sizes = [8, 32], strides = [1, 1]} : vector<8x96xf32> to vector<8x32xf32>
    %277 = vector.extract_strided_slice %274 {offsets = [0, 64], sizes = [8, 32], strides = [1, 1]} : vector<8x96xf32> to vector<8x32xf32>
    %278 = vector.extract_strided_slice %268 {offsets = [0, 96], sizes = [8, 32], strides = [1, 1]} : vector<8x128xf32> to vector<8x32xf32>
    %279 = math.tanh %278 : vector<8x32xf32>
    %280 = arith.mulf %276, %237 : vector<8x32xf32>
    %281 = arith.mulf %275, %279 : vector<8x32xf32>
    %282 = arith.addf %280, %281 : vector<8x32xf32>
    %283 = math.tanh %282 : vector<8x32xf32>
    %284 = arith.mulf %277, %283 : vector<8x32xf32>
    %285 = vector.extract_strided_slice %0 {offsets = [0, 6], sizes = [8, 1], strides = [1, 1]} : vector<8x8xf32> to vector<8x1xf32>
    %286 = vector.broadcast %285 : vector<8x1xf32> to vector<8x128xf32>
    %287 = vector.broadcast %1 : vector<1x128xf32> to vector<8x128xf32>
    %288 = arith.mulf %286, %287 : vector<8x128xf32>
    %289 = vector.broadcast %2 : vector<1x128xf32> to vector<8x128xf32>
    %290 = arith.addf %288, %289 : vector<8x128xf32>
    %cst_53 = arith.constant dense<0.000000e+00> : vector<8x128xf32>
    %291 = tpu.matmul %263, %3, %cst_53 {dimension_numbers = #tpu.dot_dimension_numbers<[1], [0], [0], [1], [0, 0, 1, 1], [], []>} : vector<8x32xf32>, vector<32x128xf32>, vector<8x128xf32> -> vector<8x128xf32>
    %292 = arith.addf %290, %291 : vector<8x128xf32>
    %293 = vector.extract_strided_slice %292 {offsets = [0, 0], sizes = [8, 96], strides = [1, 1]} : vector<8x128xf32> to vector<8x96xf32>
    %294 = arith.negf %293 : vector<8x96xf32>
    %295 = math.exp %294 : vector<8x96xf32>
    %cst_54 = arith.constant 1.000000e+00 : f32
    %296 = vector.broadcast %cst_54 : f32 to vector<8x96xf32>
    %297 = arith.addf %296, %295 : vector<8x96xf32>
    %298 = arith.divf %296, %297 : vector<8x96xf32>
    %299 = vector.extract_strided_slice %298 {offsets = [0, 0], sizes = [8, 32], strides = [1, 1]} : vector<8x96xf32> to vector<8x32xf32>
    %300 = vector.extract_strided_slice %298 {offsets = [0, 32], sizes = [8, 32], strides = [1, 1]} : vector<8x96xf32> to vector<8x32xf32>
    %301 = vector.extract_strided_slice %298 {offsets = [0, 64], sizes = [8, 32], strides = [1, 1]} : vector<8x96xf32> to vector<8x32xf32>
    %302 = vector.extract_strided_slice %292 {offsets = [0, 96], sizes = [8, 32], strides = [1, 1]} : vector<8x128xf32> to vector<8x32xf32>
    %303 = math.tanh %302 : vector<8x32xf32>
    %304 = arith.mulf %300, %261 : vector<8x32xf32>
    %305 = arith.mulf %299, %303 : vector<8x32xf32>
    %306 = arith.addf %304, %305 : vector<8x32xf32>
    %307 = math.tanh %306 : vector<8x32xf32>
    %308 = arith.mulf %301, %307 : vector<8x32xf32>
    %cst_55 = arith.constant dense<0.000000e+00> : vector<8x128xf32>
    %309 = tpu.matmul %284, %5, %cst_55 {dimension_numbers = #tpu.dot_dimension_numbers<[1], [0], [0], [1], [0, 0, 1, 1], [], []>} : vector<8x32xf32>, vector<32x128xf32>, vector<8x128xf32> -> vector<8x128xf32>
    %310 = vector.broadcast %6 : vector<1x128xf32> to vector<8x128xf32>
    %311 = arith.addf %309, %310 : vector<8x128xf32>
    %cst_56 = arith.constant dense<0.000000e+00> : vector<8x128xf32>
    %312 = tpu.matmul %308, %4, %cst_56 {dimension_numbers = #tpu.dot_dimension_numbers<[1], [0], [0], [1], [0, 0, 1, 1], [], []>} : vector<8x32xf32>, vector<32x128xf32>, vector<8x128xf32> -> vector<8x128xf32>
    %313 = arith.addf %311, %312 : vector<8x128xf32>
    %314 = vector.extract_strided_slice %313 {offsets = [0, 0], sizes = [8, 96], strides = [1, 1]} : vector<8x128xf32> to vector<8x96xf32>
    %315 = arith.negf %314 : vector<8x96xf32>
    %316 = math.exp %315 : vector<8x96xf32>
    %cst_57 = arith.constant 1.000000e+00 : f32
    %317 = vector.broadcast %cst_57 : f32 to vector<8x96xf32>
    %318 = arith.addf %317, %316 : vector<8x96xf32>
    %319 = arith.divf %317, %318 : vector<8x96xf32>
    %320 = vector.extract_strided_slice %319 {offsets = [0, 0], sizes = [8, 32], strides = [1, 1]} : vector<8x96xf32> to vector<8x32xf32>
    %321 = vector.extract_strided_slice %319 {offsets = [0, 32], sizes = [8, 32], strides = [1, 1]} : vector<8x96xf32> to vector<8x32xf32>
    %322 = vector.extract_strided_slice %319 {offsets = [0, 64], sizes = [8, 32], strides = [1, 1]} : vector<8x96xf32> to vector<8x32xf32>
    %323 = vector.extract_strided_slice %313 {offsets = [0, 96], sizes = [8, 32], strides = [1, 1]} : vector<8x128xf32> to vector<8x32xf32>
    %324 = math.tanh %323 : vector<8x32xf32>
    %325 = arith.mulf %321, %282 : vector<8x32xf32>
    %326 = arith.mulf %320, %324 : vector<8x32xf32>
    %327 = arith.addf %325, %326 : vector<8x32xf32>
    %328 = math.tanh %327 : vector<8x32xf32>
    %329 = arith.mulf %322, %328 : vector<8x32xf32>
    %330 = vector.extract_strided_slice %0 {offsets = [0, 7], sizes = [8, 1], strides = [1, 1]} : vector<8x8xf32> to vector<8x1xf32>
    %331 = vector.broadcast %330 : vector<8x1xf32> to vector<8x128xf32>
    %332 = vector.broadcast %1 : vector<1x128xf32> to vector<8x128xf32>
    %333 = arith.mulf %331, %332 : vector<8x128xf32>
    %334 = vector.broadcast %2 : vector<1x128xf32> to vector<8x128xf32>
    %335 = arith.addf %333, %334 : vector<8x128xf32>
    %cst_58 = arith.constant dense<0.000000e+00> : vector<8x128xf32>
    %336 = tpu.matmul %308, %3, %cst_58 {dimension_numbers = #tpu.dot_dimension_numbers<[1], [0], [0], [1], [0, 0, 1, 1], [], []>} : vector<8x32xf32>, vector<32x128xf32>, vector<8x128xf32> -> vector<8x128xf32>
    %337 = arith.addf %335, %336 : vector<8x128xf32>
    %338 = vector.extract_strided_slice %337 {offsets = [0, 0], sizes = [8, 96], strides = [1, 1]} : vector<8x128xf32> to vector<8x96xf32>
    %339 = arith.negf %338 : vector<8x96xf32>
    %340 = math.exp %339 : vector<8x96xf32>
    %cst_59 = arith.constant 1.000000e+00 : f32
    %341 = vector.broadcast %cst_59 : f32 to vector<8x96xf32>
    %342 = arith.addf %341, %340 : vector<8x96xf32>
    %343 = arith.divf %341, %342 : vector<8x96xf32>
    %344 = vector.extract_strided_slice %343 {offsets = [0, 0], sizes = [8, 32], strides = [1, 1]} : vector<8x96xf32> to vector<8x32xf32>
    %345 = vector.extract_strided_slice %343 {offsets = [0, 32], sizes = [8, 32], strides = [1, 1]} : vector<8x96xf32> to vector<8x32xf32>
    %346 = vector.extract_strided_slice %343 {offsets = [0, 64], sizes = [8, 32], strides = [1, 1]} : vector<8x96xf32> to vector<8x32xf32>
    %347 = vector.extract_strided_slice %337 {offsets = [0, 96], sizes = [8, 32], strides = [1, 1]} : vector<8x128xf32> to vector<8x32xf32>
    %348 = math.tanh %347 : vector<8x32xf32>
    %349 = arith.mulf %345, %306 : vector<8x32xf32>
    %350 = arith.mulf %344, %348 : vector<8x32xf32>
    %351 = arith.addf %349, %350 : vector<8x32xf32>
    %352 = math.tanh %351 : vector<8x32xf32>
    %353 = arith.mulf %346, %352 : vector<8x32xf32>
    %cst_60 = arith.constant dense<0.000000e+00> : vector<8x128xf32>
    %354 = tpu.matmul %329, %5, %cst_60 {dimension_numbers = #tpu.dot_dimension_numbers<[1], [0], [0], [1], [0, 0, 1, 1], [], []>} : vector<8x32xf32>, vector<32x128xf32>, vector<8x128xf32> -> vector<8x128xf32>
    %355 = vector.broadcast %6 : vector<1x128xf32> to vector<8x128xf32>
    %356 = arith.addf %354, %355 : vector<8x128xf32>
    %cst_61 = arith.constant dense<0.000000e+00> : vector<8x128xf32>
    %357 = tpu.matmul %353, %4, %cst_61 {dimension_numbers = #tpu.dot_dimension_numbers<[1], [0], [0], [1], [0, 0, 1, 1], [], []>} : vector<8x32xf32>, vector<32x128xf32>, vector<8x128xf32> -> vector<8x128xf32>
    %358 = arith.addf %356, %357 : vector<8x128xf32>
    %359 = vector.extract_strided_slice %358 {offsets = [0, 0], sizes = [8, 96], strides = [1, 1]} : vector<8x128xf32> to vector<8x96xf32>
    %360 = arith.negf %359 : vector<8x96xf32>
    %361 = math.exp %360 : vector<8x96xf32>
    %cst_62 = arith.constant 1.000000e+00 : f32
    %362 = vector.broadcast %cst_62 : f32 to vector<8x96xf32>
    %363 = arith.addf %362, %361 : vector<8x96xf32>
    %364 = arith.divf %362, %363 : vector<8x96xf32>
    %365 = vector.extract_strided_slice %364 {offsets = [0, 0], sizes = [8, 32], strides = [1, 1]} : vector<8x96xf32> to vector<8x32xf32>
    %366 = vector.extract_strided_slice %364 {offsets = [0, 32], sizes = [8, 32], strides = [1, 1]} : vector<8x96xf32> to vector<8x32xf32>
    %367 = vector.extract_strided_slice %364 {offsets = [0, 64], sizes = [8, 32], strides = [1, 1]} : vector<8x96xf32> to vector<8x32xf32>
    %368 = vector.extract_strided_slice %358 {offsets = [0, 96], sizes = [8, 32], strides = [1, 1]} : vector<8x128xf32> to vector<8x32xf32>
    %369 = math.tanh %368 : vector<8x32xf32>
    %370 = arith.mulf %366, %327 : vector<8x32xf32>
    %371 = arith.mulf %365, %369 : vector<8x32xf32>
    %372 = arith.addf %370, %371 : vector<8x32xf32>
    %373 = math.tanh %372 : vector<8x32xf32>
    %374 = arith.mulf %367, %373 : vector<8x32xf32>
    %375 = tpu.concatenate %59, %104, %149, %194, %239, %284, %329, %374 in 1 : vector<8x32xf32>, vector<8x32xf32>, vector<8x32xf32>, vector<8x32xf32>, vector<8x32xf32>, vector<8x32xf32>, vector<8x32xf32>, vector<8x32xf32> -> vector<8x256xf32>
    %c0_63 = arith.constant 0 : index
    %c0_64 = arith.constant 0 : index
    %376 = vector.load %arg7[%c0_63, %c0_64] : memref<256x8xf32, #tpu.memory_space<vmem>>, vector<256x8xf32>
    %cst_65 = arith.constant dense<0.000000e+00> : vector<8x8xf32>
    %377 = tpu.matmul %375, %376, %cst_65 {dimension_numbers = #tpu.dot_dimension_numbers<[1], [0], [0], [1], [0, 0, 1, 1], [], []>} : vector<8x256xf32>, vector<256x8xf32>, vector<8x8xf32> -> vector<8x8xf32>
    %c0_66 = arith.constant 0 : index
    %c0_67 = arith.constant 0 : index
    %378 = vector.load %arg8[%c0_66, %c0_67] : memref<1x1xf32, #tpu.memory_space<vmem>>, vector<1x1xf32>
    %379 = vector.broadcast %378 : vector<1x1xf32> to vector<8x8xf32>
    %380 = arith.addf %377, %379 : vector<8x8xf32>
    %c0_68 = arith.constant 0 : index
    %c0_69 = arith.constant 0 : index
    %381 = vector.load %arg11[%c0_68, %c0_69] : memref<8x8xf32, #tpu.memory_space<vmem>>, vector<8x8xf32>
    tpu.vector_store %arg11[%c0_68, %c0_69], %380 {strides = array<i32>} : memref<8x8xf32, #tpu.memory_space<vmem>>, vector<8x8xf32>,
    return
  }
}

</mosaic_0001>

<bundles_post_ra>
// kernel: tpu_custom_call.1
= control target key start
LH: loop header
LB: loop body
LE: loop exit
PB: predicated region body
PF: predicated region fallthrough
CT: control target
= control target key end

     0   :  { %s3888_s0 = inlined_call_operand.vmem [shape: f32[8,8], index: 0, kind: input, shape index: {}]   ;;  %s3889_s1 = inlined_call_operand.vmem [shape: f32[1,128], index: 1, kind: input, shape index: {}]   ;;  %s3890_s2 = inlined_call_operand.vmem [shape: f32[1,128], index: 2, kind: input, shape index: {}]   ;;  %s3891_s3 = inlined_call_operand.vmem [shape: f32[32,128], index: 3, kind: input, shape index: {}]   ;;  %s3892_s4 = inlined_call_operand.vmem [shape: f32[32,128], index: 4, kind: input, shape index: {}]   ;;  %s3893_s5 = inlined_call_operand.vmem [shape: f32[32,128], index: 5, kind: input, shape index: {}]   ;;  %s3894_s6 = inlined_call_operand.vmem [shape: f32[1,128], index: 6, kind: input, shape index: {}]   ;;  %s3895_s7 = inlined_call_operand.vmem [shape: f32[256,8], index: 7, kind: input, shape index: {}]   ;;  %s3896_s8 = inlined_call_operand.<no memory space> [shape: f32[1,1], index: 8, kind: input, shape index: {}]   ;;  %s3897_s9 = inlined_call_operand.vmem [shape: f32[2,8,32], index: 9, kind: input, shape index: {}]   ;;  %s3898_s10 = inlined_call_operand.vmem [shape: f32[2,8,32], index: 10, kind: input, shape index: {}]   ;;  %s3899_s11 = inlined_call_operand.hbm [shape: f32[8,8], index: 11, kind: output, shape index: {}]  }
   0x1   :  { %v16_v0 = vstv %s3896_s8 }
   0x2   :  { %17 = vst [vmem:[#allocation2] sm:$0x1] %v16_v0 }
   0x3   :  { %v3196_v1 = vld [vmem:[%s3891_s3 + $0x18] sm:$0xff]  ;;  %v3116_v2 = vmov 0.0   ;;  %v3202_v3 = vld [vmem:[%s3891_s3 + $0x10] sm:$0xff]  ;;  %vm3117_vm0 = vmmov 0   ;;  %v3209_v4 = vld [vmem:[%s3888_s0] sm:$0xff]  ;;  %v3118_v5 = vmov 0  }
   0x4   :  { %2652 = vmatprep.subr.mxu1 %v3116_v2  ;;  %2660 = vmatprep.mubr.msk.f32.mxu1 %vm3117_vm0, %v3116_v2  ;;  %v58_v6 = vld [vmem:[%s3898_s10] sm:$0xff]  ;;  %v3220_v7 = vld [vmem:[%s3891_s3 + $0x8] sm:$0xff] }
   0x5   :  { %2653 = vmatpush3.msra.mxu1 %v3196_v1  ;;  %2930 = vset.pattern.permute.xlu0 %v3118_v5 }
   0x6   :  { %2654 = vmatprep.subr.mxu1 %v3116_v2  ;;  %65 = vperm.xlu0 %2930, %v3209_v4  }
   0x7   :  { %18 = vsyncpa [#allocation4], 0  ;;  %2655 = vmatpush3.msra.mxu1 %v3202_v3  ;;  %s3119_s28 = smov 32   ;;  %v3229_v8 = vld [vmem:[%s3891_s3] sm:$0xff]  ;;  %2696 = vmatprep.subr.mxu0 %v3116_v2  ;;  %vm82_vm1 = vcmask 261120   ;;  %v3264_v29 = vld [vmem:[%s3893_s5 + $0x18] sm:$0xff] }
   0x8   :  { %165 = vrot.lane.b32.xlu1 %v58_v6, %s3119_s28  ;;  %2656 = vmatprep.subr.mxu1 %v3116_v2  ;;  %v57_v9 = vld [vmem:[%s3897_s9] sm:$0xff]  ;;  %v3269_v30 = vld [vmem:[%s3893_s5 + $0x10] sm:$0xff]  ;;  %v3277_v31 = vld [vmem:[%s3893_s5 + $0x8] sm:$0xff]  ;;  %v3120_v39 = vmov 1   ;;  %s3121_s18 = smov 64   ;;  %vm2316_vm2 = vcmask 523264  }
   0x9   :  { %2657 = vmatpush3.msra.mxu1 %v3220_v7  ;;  %2704 = vmatprep.mubr.msk.f32.mxu0 %vm3117_vm0, %v3116_v2  ;;  %v3247_v10 = vld [vmem:[%s3889_s1] ss:$0 sm:$0xff]  ;;  %v2451_v33 = vld [vmem:[%s3897_s9 + $0x8] sm:$0xff]  ;;  %v3298_v34 = vld [vmem:[%s3892_s4 + $0x18] sm:$0xff]  ;;  %vm2318_vm3 = vcmask 785408   ;;  %vm2435_vm4 = vcmask 64512  }
   0xa   :  { %2658 = vmatprep.subr.mxu1 %v3116_v2  ;;  %v3253_v13 = vld [vmem:[%s3890_s2] ss:$0 sm:$0xff]  ;;  %2697 = vmatpush3.msra.mxu0 %v3264_v29  ;;  %v3308_v35 = vld [vmem:[%s3892_s4 + $0x10] sm:$0xff]  ;;  %v3317_v37 = vld [vmem:[%s3892_s4 + $0x8] sm:$0xff] }
   0xb   :  { %2659 = vmatpush3.msra.mxu1 %v3229_v8  ;;  %2698 = vmatprep.subr.mxu0 %v3116_v2  ;;  %v3286_v32 = vld [vmem:[%s3893_s5] sm:$0xff]  ;;  %v2452_v42 = vld [vmem:[%s3898_s10 + $0x8] sm:$0xff] }
   0xc   :  { %2661 = vmatmul.mubr.msk.f32.vlgmr.msra.gmra.mxu1 %vm82_vm1, %v57_v9  ;;  %2663 = vmatprep.subr.mxu1 %v3116_v2  ;;  %v3326_v38 = vld [vmem:[%s3892_s4] sm:$0xff] }
   0xd   :  { %2671 = vmatprep.mubr.msk.f32.mxu1 %vm3117_vm0, %v3116_v2  ;;  %2664 = vmatpush3.msra.mxu1 %v3264_v29  ;;  %v3363_v46 = vld [vmem:[%s3894_s6] ss:$0 sm:$0xff] }
   0xe   :  { %2665 = vmatprep.subr.mxu1 %v3116_v2  ;;  %2699 = vmatpush3.msra.mxu0 %v3269_v30 }
   0xf   :  { %2666 = vmatpush3.msra.mxu1 %v3269_v30  ;;  %2700 = vmatprep.subr.mxu0 %v3116_v2 }
  0x10   :  { %2667 = vmatprep.subr.mxu1 %v3116_v2  ;;  %2701 = vmatpush3.msra.mxu0 %v3277_v31 }
  0x11   :  { %2668 = vmatpush3.msra.mxu1 %v3277_v31  ;;  %2702 = vmatprep.subr.mxu0 %v3116_v2 }
  0x12   :  { %2669 = vmatprep.subr.mxu1 %v3116_v2  ;;  %2703 = vmatpush3.msra.mxu0 %v3286_v32 }
  0x13   :  { %2670 = vmatpush3.msra.mxu1 %v3286_v32  ;;  %2718 = vmatprep.subr.mxu0 %v3116_v2 }
  0x14   :  { %2672 = vmatmul.mubr.msk.f32.vlgmr.msra.gmra.mxu1 %vm82_vm1, %v2451_v33  ;;  %2674 = vmatprep.subr.mxu1 %v3116_v2 }
  0x15   :  { %2675 = vmatpush3.msra.mxu1 %v3298_v34  ;;  %2682 = vmatprep.mubr.msk.f32.mxu1 %vm3117_vm0, %v3116_v2 }
  0x16   :  { %2676 = vmatprep.subr.mxu1 %v3116_v2  ;;  %2931 = vset.pattern.permute.xlu0 %v3120_v39 }
  0x17   :  { %2677 = vmatpush3.msra.mxu1 %v3308_v35 }
  0x18   :  { %2678 = vmatprep.subr.mxu1 %v3116_v2 }
  0x19   :  { %2679 = vmatpush3.msra.mxu1 %v3317_v37 }
  0x1a   :  { %2680 = vmatprep.subr.mxu1 %v3116_v2 }
  0x1b   :  { %2681 = vmatpush3.msra.mxu1 %v3326_v38 }
  0x1c   :  { %2685 = vmatprep.subr.mxu1 %v3116_v2 }
  0x7a   :  { %v166_v25 = vpop.permute.xlu1 %165 }
  0x81   :  { %v66_v11 = vpop.permute.xlu0 %65 }
  0x82   :  { %v74_v12 = vmul.f32 %v3247_v10, %v66_v11 }
  0x84   :  { %v81_v14 = vadd.f32 %v3253_v13, %v74_v12 }
  0xcc   :  { %v152_v15 = vpop.f32.mrf.mxu1 }
  0xcd   :  { %v156_v16 = vadd.f32 %v152_v15, %v81_v14 }
  0xce   :  { %v2662_v17 = vpop.f32.mrf.mxu1 }
  0xcf   :  { %2950 = vtanh.f32 %v156_v16  ;;  %v2456_v19 = vmul.f32 -1.442695, %v156_v16 }
  0xd1   :  { %2952 = vpow2.f32 %v2456_v19 }
  0xd4   :  { %v260_v43 = vpop.f32.mrf.mxu1 }
  0xd5   :  { %v261_v48 = vadd.f32 %v3363_v46, %v260_v43 }
  0xd6   :  { %v2673_v44 = vpop.f32.mrf.mxu1 }
  0xdc   :  { %v2951_v18 = vpop.eup %2950 }
  0xdd   :  { %170 = vrot.lane.b32.xlu0 %v2951_v18, %s3119_s28 }
  0xde   :  { %v2953_v20 = vpop.eup %2952 }
  0xdf   :  { %v160_v21 = vadd.f32 1.0, %v2953_v20 }
  0xe1   :  { %2954 = vrcp.f32 %v160_v21 }
  0xee   :  { %v2955_v22 = vpop.eup %2954 }
  0xef   :  { %v168_v26 = vmul.f32 %v2955_v22, %v166_v25  ;;  %v3122_v25 = vmov 2  }
  0xf0   :  { %2932 = vset.pattern.permute.xlu1 %v3122_v25 }
 0x14f   :  { %v171_v23 = vpop.permute.xlu0 %170 }
 0x150   :  { %v173_v24 = vmul.f32 %v2955_v22, %v171_v23 }
 0x152   :  { %175 = vrot.lane.b32.xlu1 %v173_v24, %s3119_s28 }
 0x1c4   :  { %v176_v27 = vpop.permute.xlu1 %175 }
 0x1c5   :  { %v3258_v28 = vadd.f32 %v176_v27, %v168_v26 }
 0x1c7   :  { %2956 = vtanh.f32 %v3258_v28 }
 0x1d4   :  { %v2957_v36 = vpop.eup %2956 }
 0x1d5   :  { %181 = vrot.lane.b32.xlu0 %v2957_v36, %s3119_s28 }
 0x1d9   :  { %369 = vperm.xlu0 %2931, %v3209_v4  }
 0x1dd   :  { %348 = vrot.lane.b32.xlu0 %v2452_v42, %s3119_s28 }
 0x247   :  { %v182_v40 = vpop.permute.xlu0 %181 }
 0x248   :  { %v184_v41 = vmul.f32 %v2955_v22, %v182_v40 }
 0x24a   :  { %265 = vrot.lane.b32.xlu1 %v184_v41, %s3121_s18 }
 0x254   :  { %v370_v47 = vpop.permute.xlu0 %369 }
 0x255   :  { %v372_v51 = vmul.f32 %v3247_v10, %v370_v47 }
 0x257   :  { %v373_v53 = vadd.f32 %v3253_v13, %v372_v51 }
 0x258   :  { %v349_v16 = vpop.permute.xlu0 %348 }
 0x2bc   :  { %v266_v45 = vpop.permute.xlu1 %265 }
 0x2bd   :  { %2683 = vmatmul.mubr.msk.f32.vlgmr.msra.gmra.mxu1 %vm82_vm1, %v266_v45 }
 0x2be   :  { %2686 = vmatpush3.msra.mxu1 %v3196_v1  ;;  %2693 = vmatprep.mubr.msk.f32.mxu1 %vm3117_vm0, %v3116_v2 }
 0x2bf   :  { %2687 = vmatprep.subr.mxu1 %v3116_v2 }
 0x2c0   :  { %2688 = vmatpush3.msra.mxu1 %v3202_v3 }
 0x2c1   :  { %2689 = vmatprep.subr.mxu1 %v3116_v2 }
 0x2c2   :  { %2690 = vmatpush3.msra.mxu1 %v3220_v7 }
 0x2c3   :  { %2691 = vmatprep.subr.mxu1 %v3116_v2 }
 0x2c4   :  { %2692 = vmatpush3.msra.mxu1 %v3229_v8 }
 0x2c5   :  { %2694 = vmatmul.mubr.msk.f32.vlgmr.msra.gmra.mxu1 %vm82_vm1, %v266_v45  ;;  %2707 = vmatprep.subr.mxu1 %v3116_v2 }
 0x2c6   :  { %2708 = vmatpush3.msra.mxu1 %v3298_v34  ;;  %2715 = vmatprep.mubr.msk.f32.mxu1 %vm3117_vm0, %v3116_v2 }
 0x2c7   :  { %2709 = vmatprep.subr.mxu1 %v3116_v2 }
 0x2c8   :  { %2710 = vmatpush3.msra.mxu1 %v3308_v35 }
 0x2c9   :  { %2711 = vmatprep.subr.mxu1 %v3116_v2 }
 0x2ca   :  { %2712 = vmatpush3.msra.mxu1 %v3317_v37 }
 0x2cb   :  { %2713 = vmatprep.subr.mxu1 %v3116_v2 }
 0x2cc   :  { %2714 = vmatpush3.msra.mxu1 %v3326_v38 }
 0x2cd   :  { %2729 = vmatprep.subr.mxu1 %v3116_v2 }
 0x37d   :  { %v335_v49 = vpop.f32.mrf.mxu1 }
 0x37e   :  { %v339_v50 = vadd.f32 %v335_v49, %v261_v48 }
 0x37f   :  { %v2684_v52 = vpop.f32.mrf.mxu1 }
 0x380   :  { %2958 = vtanh.f32 %v339_v50  ;;  %v2460_v59 = vmul.f32 -1.442695, %v339_v50 }
 0x385   :  { %v440_v54 = vpop.f32.mrf.mxu1 }
 0x386   :  { %v444_v55 = vadd.f32 %v440_v54, %v373_v53 }
 0x387   :  { %v2695_v56 = vpop.f32.mrf.mxu1 }
 0x388   :  { %2960 = vtanh.f32 %v444_v55  ;;  %v2462_v60 = vmul.f32 -1.442695, %v444_v55 }
 0x389   :  { %2962 = vpow2.f32 %v2460_v59 }
 0x38a   :  { %2964 = vpow2.f32 %v2462_v60 }
 0x38d   :  { %v2959_v57 = vpop.eup %2958 }
 0x38e   :  { %353 = vrot.lane.b32.xlu1 %v2959_v57, %s3119_s28 }
 0x395   :  { %v2961_v58 = vpop.eup %2960 }
 0x396   :  { %454 = vrot.lane.b32.xlu1 %v2961_v58, %s3119_s28  ;;  %v2963_v61 = vpop.eup %2962 }
 0x397   :  { %v343_v62 = vadd.f32 1.0, %v2963_v61  ;;  %v2965_v63 = vpop.eup %2964 }
 0x398   :  { %v448_v0 = vadd.f32 1.0, %v2965_v63 }
 0x399   :  { %2966 = vrcp.f32 %v343_v62 }
 0x39a   :  { %2968 = vrcp.f32 %v448_v0 }
 0x3a6   :  { %v2967_v6 = vpop.eup %2966 }
 0x3a7   :  { %v2969_v12 = vpop.eup %2968  ;;  %v351_v17 = vmul.f32 %v2967_v6, %v349_v16 }
 0x3a8   :  { %v452_v20 = vmul.f32 %v2969_v12, %v3258_v28 }
 0x400   :  { %v354_v9 = vpop.permute.xlu1 %353 }
 0x401   :  { %v356_v11 = vmul.f32 %v2967_v6, %v354_v9 }
 0x403   :  { %358 = vrot.lane.b32.xlu1 %v356_v11, %s3119_s28 }
 0x408   :  { %v455_v14 = vpop.permute.xlu1 %454 }
 0x409   :  { %v457_v15 = vmul.f32 %v2969_v12, %v455_v14 }
 0x40b   :  { %459 = vrot.lane.b32.xlu0 %v457_v15, %s3119_s28 }
 0x475   :  { %v359_v18 = vpop.permute.xlu1 %358 }
 0x476   :  { %v3372_v19 = vadd.f32 %v359_v18, %v351_v17 }
 0x478   :  { %2970 = vtanh.f32 %v3372_v19 }
 0x47d   :  { %v460_v21 = vpop.permute.xlu0 %459 }
 0x47e   :  { %v3376_v22 = vadd.f32 %v460_v21, %v452_v20  ;;  %v3123_v21 = vmov 3  }
 0x47f   :  { %2933 = vset.pattern.permute.xlu0 %v3123_v21 }
 0x480   :  { %2972 = vtanh.f32 %v3376_v22 }
 0x485   :  { %v2971_v23 = vpop.eup %2970 }
 0x486   :  { %364 = vrot.lane.b32.xlu1 %v2971_v23, %s3119_s28 }
 0x48d   :  { %v2973_v24 = vpop.eup %2972 }
 0x48e   :  { %465 = vrot.lane.b32.xlu0 %v2973_v24, %s3119_s28 }
 0x4f8   :  { %v365_v26 = vpop.permute.xlu1 %364 }
 0x4f9   :  { %v367_v27 = vmul.f32 %v2967_v6, %v365_v26 }
 0x4fb   :  { %470 = vrot.lane.b32.xlu1 %v367_v27, %s3121_s18 }
 0x4ff   :  { %645 = vperm.xlu1 %2932, %v3209_v4  }
 0x500   :  { %v466_v28 = vpop.permute.xlu0 %465 }
 0x501   :  { %v468_v33 = vmul.f32 %v2969_v12, %v466_v28 }
 0x503   :  { %545 = vrot.lane.b32.xlu0 %v468_v33, %s3121_s18  ;;  %2948 = vset.pattern.permute.xlu1 %v3118_v5 }
 0x56d   :  { %v3385_v36 = vpop.permute.xlu1 %470 }
 0x56e   :  { %2705 = vmatmul.mubr.msk.f32.vlgmr.msra.gmra.mxu0 %vm82_vm1, %v3385_v36 }
 0x56f   :  { %2719 = vmatpush3.msra.mxu0 %v3196_v1  ;;  %2726 = vmatprep.mubr.msk.f32.mxu0 %vm3117_vm0, %v3116_v2 }
 0x570   :  { %2720 = vmatprep.subr.mxu0 %v3116_v2 }
 0x571   :  { %2721 = vmatpush3.msra.mxu0 %v3202_v3 }
 0x572   :  { %2722 = vmatprep.subr.mxu0 %v3116_v2 }
 0x573   :  { %2723 = vmatpush3.msra.mxu0 %v3220_v7 }
 0x574   :  { %2724 = vmatprep.subr.mxu0 %v3116_v2 }
 0x575   :  { %2725 = vmatpush3.msra.mxu0 %v3229_v8  ;;  %v546_v39 = vpop.permute.xlu0 %545 }
 0x576   :  { %2716 = vmatmul.mubr.msk.f32.vlgmr.msra.gmra.mxu1 %vm82_vm1, %v546_v39  ;;  %2727 = vmatmul.mubr.msk.f32.vlgmr.msra.gmra.mxu0 %vm82_vm1, %v546_v39 }
 0x577   :  { %2730 = vmatpush3.msra.mxu1 %v3264_v29  ;;  %2740 = vmatprep.subr.mxu0 %v3116_v2 }
 0x578   :  { %2731 = vmatprep.subr.mxu1 %v3116_v2  ;;  %2741 = vmatpush3.msra.mxu0 %v3298_v34 }
 0x579   :  { %2732 = vmatpush3.msra.mxu1 %v3269_v30  ;;  %2742 = vmatprep.subr.mxu0 %v3116_v2 }
 0x57a   :  { %2733 = vmatprep.subr.mxu1 %v3116_v2  ;;  %2743 = vmatpush3.msra.mxu0 %v3308_v35  ;;  %v646_v40 = vpop.permute.xlu1 %645 }
 0x57b   :  { %2734 = vmatpush3.msra.mxu1 %v3277_v31  ;;  %2744 = vmatprep.subr.mxu0 %v3116_v2  ;;  %v648_v42 = vmul.f32 %v3247_v10, %v646_v40 }
 0x57c   :  { %2735 = vmatprep.subr.mxu1 %v3116_v2  ;;  %2745 = vmatpush3.msra.mxu0 %v3317_v37 }
 0x57d   :  { %2736 = vmatpush3.msra.mxu1 %v3286_v32  ;;  %2746 = vmatprep.subr.mxu0 %v3116_v2  ;;  %v649_v44 = vadd.f32 %v3253_v13, %v648_v42 }
 0x57e   :  { %2747 = vmatpush3.msra.mxu0 %v3326_v38  ;;  %2748 = vmatprep.mubr.msk.f32.mxu0 %vm3117_vm0, %v3116_v2 }
 0x57f   :  { %2737 = vmatprep.mubr.msk.f32.mxu1 %vm3117_vm0, %v3116_v2  ;;  %2751 = vmatprep.subr.mxu1 %v3116_v2 }
 0x580   :  { %2762 = vmatprep.subr.mxu0 %v3116_v2 }
 0x62e   :  { %v540_v41 = vpop.f32.mrf.mxu0 }
 0x62f   :  { %v541_v45 = vadd.f32 %v3363_v46, %v540_v41 }
 0x630   :  { %v2706_v43 = vpop.f32.mrf.mxu0 }
 0x636   :  { %v615_v47 = vpop.f32.mrf.mxu1  ;;  %v716_v48 = vpop.f32.mrf.mxu0 }
 0x637   :  { %v619_v49 = vadd.f32 %v615_v47, %v541_v45  ;;  %v720_v50 = vadd.f32 %v716_v48, %v649_v44 }
 0x638   :  { %v2717_v51 = vpop.f32.mrf.mxu1  ;;  %v2728_v52 = vpop.f32.mrf.mxu0 }
 0x639   :  { %2974 = vtanh.f32 %v619_v49  ;;  %v2465_v55 = vmul.f32 -1.442695, %v619_v49  ;;  %v2467_v56 = vmul.f32 -1.442695, %v720_v50 }
 0x63a   :  { %2976 = vtanh.f32 %v720_v50 }
 0x63b   :  { %2978 = vpow2.f32 %v2465_v55 }
 0x63c   :  { %2980 = vpow2.f32 %v2467_v56 }
 0x646   :  { %v2975_v53 = vpop.eup %2974 }
 0x647   :  { %v2977_v54 = vpop.eup %2976  ;;  %629 = vrot.lane.b32.xlu0 %v2975_v53, %s3119_s28 }
 0x648   :  { %730 = vrot.lane.b32.xlu1 %v2977_v54, %s3119_s28  ;;  %v2979_v57 = vpop.eup %2978 }
 0x649   :  { %v2981_v58 = vpop.eup %2980  ;;  %v623_v59 = vadd.f32 1.0, %v2979_v57 }
 0x64a   :  { %v724_v60 = vadd.f32 1.0, %v2981_v58 }
 0x64b   :  { %2982 = vrcp.f32 %v623_v59 }
 0x64c   :  { %2984 = vrcp.f32 %v724_v60 }
 0x658   :  { %v2983_v61 = vpop.eup %2982 }
 0x659   :  { %v2985_v63 = vpop.eup %2984  ;;  %v627_v11 = vmul.f32 %v2983_v61, %v3372_v19 }
 0x65a   :  { %v728_v12 = vmul.f32 %v2985_v63, %v3376_v22 }
 0x6b9   :  { %v630_v62 = vpop.permute.xlu0 %629 }
 0x6ba   :  { %v731_v0 = vpop.permute.xlu1 %730  ;;  %v632_v6 = vmul.f32 %v2983_v61, %v630_v62 }
 0x6bb   :  { %v733_v9 = vmul.f32 %v2985_v63, %v731_v0 }
 0x6bc   :  { %634 = vrot.lane.b32.xlu0 %v632_v6, %s3119_s28 }
 0x6bd   :  { %735 = vrot.lane.b32.xlu1 %v733_v9, %s3119_s28 }
 0x72e   :  { %v635_v14 = vpop.permute.xlu0 %634 }
 0x72f   :  { %v736_v15 = vpop.permute.xlu1 %735  ;;  %v3430_v16 = vadd.f32 %v635_v14, %v627_v11 }
 0x730   :  { %v3432_v17 = vadd.f32 %v736_v15, %v728_v12 }
 0x731   :  { %2986 = vtanh.f32 %v3430_v16 }
 0x732   :  { %2988 = vtanh.f32 %v3432_v17 }
 0x73e   :  { %v2987_v18 = vpop.eup %2986 }
 0x73f   :  { %v2989_v20 = vpop.eup %2988  ;;  %640 = vrot.lane.b32.xlu0 %v2987_v18, %s3119_s28  ;;  %v3124_v18 = vmov 4  }
 0x740   :  { %741 = vrot.lane.b32.xlu1 %v2989_v20, %s3119_s28 }
 0x7b1   :  { %v641_v19 = vpop.permute.xlu0 %640 }
 0x7b2   :  { %v742_v22 = vpop.permute.xlu1 %741  ;;  %v3438_v23 = vmul.f32 %v2983_v61, %v641_v19 }
 0x7b3   :  { %v744_v24 = vmul.f32 %v2985_v63, %v742_v22 }
 0x7b4   :  { %746 = vrot.lane.b32.xlu0 %v3438_v23, %s3121_s18 }
 0x7b5   :  { %821 = vrot.lane.b32.xlu1 %v744_v24, %s3121_s18 }
 0x7b8   :  { %921 = vperm.xlu0 %2933, %v3209_v4  }
 0x7bc   :  { %2934 = vset.pattern.permute.xlu0 %v3124_v18 }
 0x826   :  { %v747_v25 = vpop.permute.xlu0 %746 }
 0x827   :  { %v822_v26 = vpop.permute.xlu1 %821  ;;  %2738 = vmatmul.mubr.msk.f32.vlgmr.msra.gmra.mxu1 %vm82_vm1, %v747_v25 }
 0x828   :  { %2749 = vmatmul.mubr.msk.f32.vlgmr.msra.gmra.mxu0 %vm82_vm1, %v822_v26  ;;  %2752 = vmatpush3.msra.mxu1 %v3196_v1 }
 0x829   :  { %2753 = vmatprep.subr.mxu1 %v3116_v2  ;;  %2759 = vmatprep.mubr.msk.f32.mxu1 %vm3117_vm0, %v3116_v2 }
 0x82a   :  { %2754 = vmatpush3.msra.mxu1 %v3202_v3  ;;  %2763 = vmatpush3.msra.mxu0 %v3264_v29 }
 0x82b   :  { %2755 = vmatprep.subr.mxu1 %v3116_v2  ;;  %2764 = vmatprep.subr.mxu0 %v3116_v2 }
 0x82c   :  { %2756 = vmatpush3.msra.mxu1 %v3220_v7  ;;  %2765 = vmatpush3.msra.mxu0 %v3269_v30 }
 0x82d   :  { %2757 = vmatprep.subr.mxu1 %v3116_v2  ;;  %2766 = vmatprep.subr.mxu0 %v3116_v2 }
 0x82e   :  { %2758 = vmatpush3.msra.mxu1 %v3229_v8  ;;  %2767 = vmatpush3.msra.mxu0 %v3277_v31 }
 0x82f   :  { %2760 = vmatmul.mubr.msk.f32.vlgmr.msra.gmra.mxu1 %vm82_vm1, %v822_v26  ;;  %2768 = vmatprep.subr.mxu0 %v3116_v2 }
 0x830   :  { %2773 = vmatprep.subr.mxu1 %v3116_v2  ;;  %2769 = vmatpush3.msra.mxu0 %v3286_v32 }
 0x831   :  { %2774 = vmatpush3.msra.mxu1 %v3298_v34  ;;  %2770 = vmatprep.mubr.msk.f32.mxu0 %vm3117_vm0, %v3116_v2 }
 0x832   :  { %2775 = vmatprep.subr.mxu1 %v3116_v2  ;;  %2784 = vmatprep.subr.mxu0 %v3116_v2 }
 0x833   :  { %2776 = vmatpush3.msra.mxu1 %v3308_v35  ;;  %2781 = vmatprep.mubr.msk.f32.mxu1 %vm3117_vm0, %v3116_v2  ;;  %v922_v27 = vpop.permute.xlu0 %921 }
 0x834   :  { %2777 = vmatprep.subr.mxu1 %v3116_v2  ;;  %v924_v40 = vmul.f32 %v3247_v10, %v922_v27 }
 0x835   :  { %2778 = vmatpush3.msra.mxu1 %v3317_v37 }
 0x836   :  { %2779 = vmatprep.subr.mxu1 %v3116_v2  ;;  %v925_v44 = vadd.f32 %v3253_v13, %v924_v40 }
 0x837   :  { %2780 = vmatpush3.msra.mxu1 %v3326_v38 }
 0x838   :  { %2795 = vmatprep.subr.mxu1 %v3116_v2 }
 0x8e7   :  { %v816_v28 = vpop.f32.mrf.mxu1 }
 0x8e8   :  { %v817_v33 = vadd.f32 %v3363_v46, %v816_v28  ;;  %v891_v39 = vpop.f32.mrf.mxu0 }
 0x8e9   :  { %v2739_v41 = vpop.f32.mrf.mxu1 }
 0x8ea   :  { %v895_v42 = vadd.f32 %v891_v39, %v817_v33  ;;  %v2750_v43 = vpop.f32.mrf.mxu0 }
 0x8ec   :  { %2990 = vtanh.f32 %v895_v42  ;;  %v2470_v51 = vmul.f32 -1.442695, %v895_v42 }
 0x8ef   :  { %v992_v45 = vpop.f32.mrf.mxu1 }
 0x8f0   :  { %v996_v47 = vadd.f32 %v992_v45, %v925_v44 }
 0x8f1   :  { %v2761_v48 = vpop.f32.mrf.mxu1 }
 0x8f2   :  { %2992 = vtanh.f32 %v996_v47  ;;  %v2472_v52 = vmul.f32 -1.442695, %v996_v47 }
 0x8f3   :  { %2994 = vpow2.f32 %v2470_v51 }
 0x8f4   :  { %2996 = vpow2.f32 %v2472_v52 }
 0x8f9   :  { %v2991_v49 = vpop.eup %2990 }
 0x8fa   :  { %905 = vrot.lane.b32.xlu1 %v2991_v49, %s3119_s28 }
 0x8ff   :  { %v2993_v50 = vpop.eup %2992 }
 0x900   :  { %1006 = vrot.lane.b32.xlu1 %v2993_v50, %s3119_s28  ;;  %v2995_v53 = vpop.eup %2994 }
 0x901   :  { %v899_v54 = vadd.f32 1.0, %v2995_v53  ;;  %v2997_v55 = vpop.eup %2996 }
 0x902   :  { %v1000_v56 = vadd.f32 1.0, %v2997_v55 }
 0x903   :  { %2998 = vrcp.f32 %v899_v54 }
 0x904   :  { %3000 = vrcp.f32 %v1000_v56 }
 0x910   :  { %v2999_v57 = vpop.eup %2998 }
 0x911   :  { %v3001_v60 = vpop.eup %3000  ;;  %v903_v63 = vmul.f32 %v2999_v57, %v3430_v16 }
 0x912   :  { %v1004_v9 = vmul.f32 %v3001_v60, %v3432_v17 }
 0x96c   :  { %v906_v58 = vpop.permute.xlu1 %905 }
 0x96d   :  { %v908_v59 = vmul.f32 %v2999_v57, %v906_v58 }
 0x96f   :  { %910 = vrot.lane.b32.xlu0 %v908_v59, %s3119_s28 }
 0x972   :  { %v1007_v61 = vpop.permute.xlu1 %1006 }
 0x973   :  { %v1009_v62 = vmul.f32 %v3001_v60, %v1007_v61 }
 0x975   :  { %1011 = vrot.lane.b32.xlu1 %v1009_v62, %s3119_s28 }
 0x9e1   :  { %v911_v0 = vpop.permute.xlu0 %910 }
 0x9e2   :  { %v3485_v6 = vadd.f32 %v911_v0, %v903_v63 }
 0x9e4   :  { %3002 = vtanh.f32 %v3485_v6 }
 0x9e7   :  { %v1012_v11 = vpop.permute.xlu1 %1011 }
 0x9e8   :  { %v3489_v12 = vadd.f32 %v1012_v11, %v1004_v9 }
 0x9ea   :  { %3004 = vtanh.f32 %v3489_v12 }
 0x9f1   :  { %v3003_v14 = vpop.eup %3002 }
 0x9f2   :  { %916 = vrot.lane.b32.xlu0 %v3003_v14, %s3119_s28 }
 0x9f7   :  { %v3005_v15 = vpop.eup %3004 }
 0x9f8   :  { %1017 = vrot.lane.b32.xlu1 %v3005_v15, %s3119_s28  ;;  %v3125_v15 = vmov 5  }
 0xa64   :  { %v917_v16 = vpop.permute.xlu0 %916 }
 0xa65   :  { %v3494_v20 = vmul.f32 %v2999_v57, %v917_v16 }
 0xa67   :  { %1022 = vrot.lane.b32.xlu0 %v3494_v20, %s3121_s18 }
 0xa6a   :  { %v1018_v17 = vpop.permute.xlu1 %1017 }
 0xa6b   :  { %v1020_v21 = vmul.f32 %v3001_v60, %v1018_v17  ;;  %1197 = vperm.xlu0 %2934, %v3209_v4  }
 0xa6d   :  { %1097 = vrot.lane.b32.xlu1 %v1020_v21, %s3121_s18 }
 0xa6f   :  { %2935 = vset.pattern.permute.xlu0 %v3125_v15 }
 0xad9   :  { %v1023_v19 = vpop.permute.xlu0 %1022 }
 0xada   :  { %2771 = vmatmul.mubr.msk.f32.vlgmr.msra.gmra.mxu0 %vm82_vm1, %v1023_v19 }
 0xadb   :  { %2785 = vmatpush3.msra.mxu0 %v3196_v1  ;;  %2792 = vmatprep.mubr.msk.f32.mxu0 %vm3117_vm0, %v3116_v2 }
 0xadc   :  { %2786 = vmatprep.subr.mxu0 %v3116_v2 }
 0xadd   :  { %2787 = vmatpush3.msra.mxu0 %v3202_v3 }
 0xade   :  { %2788 = vmatprep.subr.mxu0 %v3116_v2 }
 0xadf   :  { %2789 = vmatpush3.msra.mxu0 %v3220_v7  ;;  %v1098_v22 = vpop.permute.xlu1 %1097 }
 0xae0   :  { %2782 = vmatmul.mubr.msk.f32.vlgmr.msra.gmra.mxu1 %vm82_vm1, %v1098_v22  ;;  %2790 = vmatprep.subr.mxu0 %v3116_v2 }
 0xae1   :  { %2791 = vmatpush3.msra.mxu0 %v3229_v8  ;;  %2796 = vmatpush3.msra.mxu1 %v3264_v29 }
 0xae2   :  { %2793 = vmatmul.mubr.msk.f32.vlgmr.msra.gmra.mxu0 %vm82_vm1, %v1098_v22  ;;  %2797 = vmatprep.subr.mxu1 %v3116_v2 }
 0xae3   :  { %2798 = vmatpush3.msra.mxu1 %v3269_v30  ;;  %2806 = vmatprep.subr.mxu0 %v3116_v2 }
 0xae4   :  { %2799 = vmatprep.subr.mxu1 %v3116_v2  ;;  %2807 = vmatpush3.msra.mxu0 %v3298_v34 }
 0xae5   :  { %2800 = vmatpush3.msra.mxu1 %v3277_v31  ;;  %2808 = vmatprep.subr.mxu0 %v3116_v2 }
 0xae6   :  { %2801 = vmatprep.subr.mxu1 %v3116_v2  ;;  %2803 = vmatprep.mubr.msk.f32.mxu1 %vm3117_vm0, %v3116_v2  ;;  %v1198_v24 = vpop.permute.xlu0 %1197 }
 0xae7   :  { %2802 = vmatpush3.msra.mxu1 %v3286_v32  ;;  %2809 = vmatpush3.msra.mxu0 %v3308_v35  ;;  %v1200_v26 = vmul.f32 %v3247_v10, %v1198_v24 }
 0xae8   :  { %2817 = vmatprep.subr.mxu1 %v3116_v2  ;;  %2810 = vmatprep.subr.mxu0 %v3116_v2 }
 0xae9   :  { %2811 = vmatpush3.msra.mxu0 %v3317_v37  ;;  %2814 = vmatprep.mubr.msk.f32.mxu0 %vm3117_vm0, %v3116_v2  ;;  %v1201_v33 = vadd.f32 %v3253_v13, %v1200_v26 }
 0xaea   :  { %2812 = vmatprep.subr.mxu0 %v3116_v2 }
 0xaeb   :  { %2813 = vmatpush3.msra.mxu0 %v3326_v38 }
 0xaec   :  { %2828 = vmatprep.subr.mxu0 %v3116_v2 }
 0xb9a   :  { %v1092_v25 = vpop.f32.mrf.mxu0 }
 0xb9b   :  { %v1093_v28 = vadd.f32 %v3363_v46, %v1092_v25 }
 0xb9c   :  { %v2772_v27 = vpop.f32.mrf.mxu0 }
 0xba0   :  { %v1167_v39 = vpop.f32.mrf.mxu1 }
 0xba1   :  { %v1171_v40 = vadd.f32 %v1167_v39, %v1093_v28 }
 0xba2   :  { %v2783_v41 = vpop.f32.mrf.mxu1  ;;  %v1268_v42 = vpop.f32.mrf.mxu0 }
 0xba3   :  { %3006 = vtanh.f32 %v1171_v40  ;;  %v1272_v43 = vadd.f32 %v1268_v42, %v1201_v33  ;;  %v2475_v48 = vmul.f32 -1.442695, %v1171_v40 }
 0xba4   :  { %v2794_v44 = vpop.f32.mrf.mxu0 }
 0xba5   :  { %3008 = vtanh.f32 %v1272_v43  ;;  %v2477_v49 = vmul.f32 -1.442695, %v1272_v43 }
 0xba6   :  { %3010 = vpow2.f32 %v2475_v48 }
 0xba7   :  { %3012 = vpow2.f32 %v2477_v49 }
 0xbb0   :  { %v3007_v45 = vpop.eup %3006 }
 0xbb1   :  { %1181 = vrot.lane.b32.xlu1 %v3007_v45, %s3119_s28 }
 0xbb2   :  { %v3009_v47 = vpop.eup %3008 }
 0xbb3   :  { %v3011_v50 = vpop.eup %3010 }
 0xbb4   :  { %v1175_v51 = vadd.f32 1.0, %v3011_v50  ;;  %v3013_v52 = vpop.eup %3012 }
 0xbb5   :  { %1282 = vrot.lane.b32.xlu1 %v3009_v47, %s3119_s28  ;;  %v1276_v53 = vadd.f32 1.0, %v3013_v52 }
 0xbb6   :  { %3014 = vrcp.f32 %v1175_v51 }
 0xbb7   :  { %3016 = vrcp.f32 %v1276_v53 }
 0xbc3   :  { %v3015_v54 = vpop.eup %3014 }
 0xbc4   :  { %v3017_v57 = vpop.eup %3016  ;;  %v1179_v60 = vmul.f32 %v3015_v54, %v3485_v6 }
 0xbc5   :  { %v1280_v63 = vmul.f32 %v3017_v57, %v3489_v12 }
 0xc23   :  { %v1182_v55 = vpop.permute.xlu1 %1181 }
 0xc24   :  { %v1184_v56 = vmul.f32 %v3015_v54, %v1182_v55 }
 0xc26   :  { %1186 = vrot.lane.b32.xlu0 %v1184_v56, %s3119_s28 }
 0xc27   :  { %v1283_v58 = vpop.permute.xlu1 %1282 }
 0xc28   :  { %v1285_v59 = vmul.f32 %v3017_v57, %v1283_v58 }
 0xc2a   :  { %1287 = vrot.lane.b32.xlu1 %v1285_v59, %s3119_s28  ;;  %v3126_v59 = vmov 6  }
 0xc98   :  { %v1187_v61 = vpop.permute.xlu0 %1186 }
 0xc99   :  { %v3541_v62 = vadd.f32 %v1187_v61, %v1179_v60 }
 0xc9b   :  { %3018 = vtanh.f32 %v3541_v62 }
 0xc9c   :  { %v1288_v0 = vpop.permute.xlu1 %1287 }
 0xc9d   :  { %v3545_v9 = vadd.f32 %v1288_v0, %v1280_v63  ;;  %v3611_v0 = vld [vmem:[%s3888_s0] sm:$0xff] }
 0xc9f   :  { %3020 = vtanh.f32 %v3545_v9 }
 0xca8   :  { %v3019_v11 = vpop.eup %3018 }
 0xca9   :  { %1192 = vrot.lane.b32.xlu0 %v3019_v11, %s3119_s28  ;;  %v3621_v11 = vld [vmem:[%s3891_s3 + $0x18] sm:$0xff] }
 0xcac   :  { %v3021_v14 = vpop.eup %3020 }
 0xcad   :  { %1293 = vrot.lane.b32.xlu1 %v3021_v14, %s3119_s28  ;;  %v3630_v14 = vld [vmem:[%s3891_s3 + $0x10] sm:$0xff] }
 0xd1b   :  { %v1193_v6 = vpop.permute.xlu0 %1192 }
 0xd1c   :  { %v3550_v18 = vmul.f32 %v3015_v54, %v1193_v6  ;;  %v3638_v6 = vld [vmem:[%s3891_s3 + $0x8] sm:$0xff] }
 0xd1e   :  { %1298 = vrot.lane.b32.xlu0 %v3550_v18, %s3121_s18 }
 0xd1f   :  { %v1294_v12 = vpop.permute.xlu1 %1293 }
 0xd20   :  { %v1296_v16 = vmul.f32 %v3017_v57, %v1294_v12  ;;  %v3647_v12 = vld [vmem:[%s3891_s3] sm:$0xff] }
 0xd22   :  { %1373 = vrot.lane.b32.xlu1 %v1296_v16, %s3121_s18  ;;  %1473 = vperm.xlu0 %2935, %v3209_v4  }
 0xd26   :  { %2936 = vset.pattern.permute.xlu0 %v3126_v59  ;;  %v3089_v59 = vld [vmem:[%s3893_s5] sm:$0xff] }
 0xd90   :  { %v1299_v17 = vpop.permute.xlu0 %1298 }
 0xd91   :  { %2804 = vmatmul.mubr.msk.f32.vlgmr.msra.gmra.mxu1 %vm82_vm1, %v1299_v17 }
 0xd92   :  { %2818 = vmatpush3.msra.mxu1 %v3196_v1  ;;  %2825 = vmatprep.mubr.msk.f32.mxu1 %vm3117_vm0, %v3116_v2 }
 0xd93   :  { %2819 = vmatprep.subr.mxu1 %v3116_v2 }
 0xd94   :  { %2820 = vmatpush3.msra.mxu1 %v3202_v3  ;;  %v1374_v21 = vpop.permute.xlu1 %1373 }
 0xd95   :  { %2821 = vmatprep.subr.mxu1 %v3116_v2  ;;  %2815 = vmatmul.mubr.msk.f32.vlgmr.msra.gmra.mxu0 %vm82_vm1, %v1374_v21 }
 0xd96   :  { %2822 = vmatpush3.msra.mxu1 %v3220_v7  ;;  %2829 = vmatpush3.msra.mxu0 %v3264_v29 }
 0xd97   :  { %2823 = vmatprep.subr.mxu1 %v3116_v2  ;;  %2830 = vmatprep.subr.mxu0 %v3116_v2 }
 0xd98   :  { %2824 = vmatpush3.msra.mxu1 %v3229_v8  ;;  %2831 = vmatpush3.msra.mxu0 %v3269_v30 }
 0xd99   :  { %2826 = vmatmul.mubr.msk.f32.vlgmr.msra.gmra.mxu1 %vm82_vm1, %v1374_v21  ;;  %2832 = vmatprep.subr.mxu0 %v3116_v2 }
 0xd9a   :  { %2833 = vmatpush3.msra.mxu0 %v3277_v31  ;;  %2839 = vmatprep.subr.mxu1 %v3116_v2 }
 0xd9b   :  { %2834 = vmatprep.subr.mxu0 %v3116_v2  ;;  %2840 = vmatpush3.msra.mxu1 %v3298_v34 }
 0xd9c   :  { %2835 = vmatpush3.msra.mxu0 %v3286_v32  ;;  %2841 = vmatprep.subr.mxu1 %v3116_v2 }
 0xd9d   :  { %2836 = vmatprep.mubr.msk.f32.mxu0 %vm3117_vm0, %v3116_v2  ;;  %2842 = vmatpush3.msra.mxu1 %v3308_v35  ;;  %v1474_v1 = vpop.permute.xlu0 %1473 }
 0xd9e   :  { %2850 = vmatprep.subr.mxu0 %v3116_v2  ;;  %2843 = vmatprep.subr.mxu1 %v3116_v2  ;;  %v1476_v4 = vmul.f32 %v3247_v10, %v1474_v1 }
 0xd9f   :  { %2844 = vmatpush3.msra.mxu1 %v3317_v37  ;;  %2847 = vmatprep.mubr.msk.f32.mxu1 %vm3117_vm0, %v3116_v2 }
 0xda0   :  { %2845 = vmatprep.subr.mxu1 %v3116_v2  ;;  %v1477_v24 = vadd.f32 %v3253_v13, %v1476_v4 }
 0xda1   :  { %2846 = vmatpush3.msra.mxu1 %v3326_v38 }
 0xda2   :  { %2861 = vmatprep.subr.mxu1 %v3116_v2 }
 0xe51   :  { %v1368_v3 = vpop.f32.mrf.mxu1 }
 0xe52   :  { %v1369_v8 = vadd.f32 %v3363_v46, %v1368_v3 }
 0xe53   :  { %v2805_v7 = vpop.f32.mrf.mxu1 }
 0xe55   :  { %v1443_v19 = vpop.f32.mrf.mxu0 }
 0xe56   :  { %v1447_v22 = vadd.f32 %v1443_v19, %v1369_v8 }
 0xe57   :  { %v2816_v25 = vpop.f32.mrf.mxu0 }
 0xe58   :  { %3022 = vtanh.f32 %v1447_v22  ;;  %v2480_v10 = vmul.f32 -1.442695, %v1447_v22 }
 0xe59   :  { %v1544_v26 = vpop.f32.mrf.mxu1 }
 0xe5a   :  { %v1548_v27 = vadd.f32 %v1544_v26, %v1477_v24 }
 0xe5b   :  { %v2827_v28 = vpop.f32.mrf.mxu1 }
 0xe5c   :  { %3024 = vtanh.f32 %v1548_v27  ;;  %v2482_v40 = vmul.f32 -1.442695, %v1548_v27 }
 0xe5d   :  { %3026 = vpow2.f32 %v2480_v10 }
 0xe5e   :  { %3028 = vpow2.f32 %v2482_v40 }
 0xe65   :  { %v3023_v33 = vpop.eup %3022 }
 0xe66   :  { %1457 = vrot.lane.b32.xlu1 %v3023_v33, %s3119_s28 }
 0xe69   :  { %v3025_v39 = vpop.eup %3024 }
 0xe6a   :  { %1558 = vrot.lane.b32.xlu1 %v3025_v39, %s3119_s28  ;;  %v3027_v41 = vpop.eup %3026 }
 0xe6b   :  { %v1451_v42 = vadd.f32 1.0, %v3027_v41  ;;  %v3029_v43 = vpop.eup %3028 }
 0xe6c   :  { %v1552_v13 = vadd.f32 1.0, %v3029_v43 }
 0xe6d   :  { %3030 = vrcp.f32 %v1451_v42 }
 0xe6e   :  { %3032 = vrcp.f32 %v1552_v13 }
 0xe7a   :  { %v3031_v44 = vpop.eup %3030 }
 0xe7b   :  { %v3033_v48 = vpop.eup %3032  ;;  %v1455_v51 = vmul.f32 %v3031_v44, %v3541_v62 }
 0xe7c   :  { %v1556_v54 = vmul.f32 %v3033_v48, %v3545_v9 }
 0xed8   :  { %v1458_v45 = vpop.permute.xlu1 %1457 }
 0xed9   :  { %v1460_v47 = vmul.f32 %v3031_v44, %v1458_v45 }
 0xedb   :  { %1462 = vrot.lane.b32.xlu0 %v1460_v47, %s3119_s28 }
 0xedc   :  { %v1559_v49 = vpop.permute.xlu1 %1558 }
 0xedd   :  { %v1561_v50 = vmul.f32 %v3033_v48, %v1559_v49  ;;  %v3127_v49 = vmov 7  }
 0xedf   :  { %1563 = vrot.lane.b32.xlu1 %v1561_v50, %s3119_s28 }
 0xf4d   :  { %v1463_v52 = vpop.permute.xlu0 %1462 }
 0xf4e   :  { %v3597_v53 = vadd.f32 %v1463_v52, %v1455_v51 }
 0xf50   :  { %3034 = vtanh.f32 %v3597_v53 }
 0xf51   :  { %v1564_v55 = vpop.permute.xlu1 %1563 }
 0xf52   :  { %v3601_v56 = vadd.f32 %v1564_v55, %v1556_v54 }
 0xf54   :  { %3036 = vtanh.f32 %v3601_v56 }
 0xf5d   :  { %v3035_v57 = vpop.eup %3034 }
 0xf5e   :  { %1468 = vrot.lane.b32.xlu0 %v3035_v57, %s3119_s28  ;;  %v3087_v57 = vld [vmem:[%s3893_s5 + $0x8] sm:$0xff] }
 0xf61   :  { %v3037_v58 = vpop.eup %3036 }
 0xf62   :  { %1569 = vrot.lane.b32.xlu1 %v3037_v58, %s3119_s28  ;;  %v3088_v58 = vld [vmem:[%s3892_s4 + $0x18] sm:$0xff] }
 0xfd0   :  { %v1469_v60 = vpop.permute.xlu0 %1468 }
 0xfd1   :  { %v1471_v61 = vmul.f32 %v3031_v44, %v1469_v60  ;;  %v3090_v60 = vld [vmem:[%s3892_s4 + $0x10] sm:$0xff] }
 0xfd3   :  { %1574 = vrot.lane.b32.xlu0 %v1471_v61, %s3121_s18  ;;  %v3091_v61 = vld [vmem:[%s3892_s4 + $0x8] sm:$0xff] }
 0xfd4   :  { %v1570_v62 = vpop.permute.xlu1 %1569 }
 0xfd5   :  { %v1572_v63 = vmul.f32 %v3033_v48, %v1570_v62  ;;  %v3092_v62 = vld [vmem:[%s3892_s4] sm:$0xff]  ;;  %s3128_s4 = smov 96  }
 0xfd7   :  { %1649 = vrot.lane.b32.xlu1 %v1572_v63, %s3121_s18  ;;  %1749 = vperm.xlu0 %2936, %v3611_v0  }
 0xfdb   :  { %2937 = vset.pattern.permute.xlu0 %v3127_v49 }
0x1045   :  { %v3614_v9 = vpop.permute.xlu0 %1574 }
0x1046   :  { %2837 = vmatmul.mubr.msk.f32.vlgmr.msra.gmra.mxu0 %vm82_vm1, %v3614_v9 }
0x1047   :  { %2851 = vmatpush3.msra.mxu0 %v3621_v11  ;;  %2858 = vmatprep.mubr.msk.f32.mxu0 %vm3117_vm0, %v3116_v2 }
0x1048   :  { %2852 = vmatprep.subr.mxu0 %v3116_v2 }
0x1049   :  { %2853 = vmatpush3.msra.mxu0 %v3630_v14  ;;  %v1650_v15 = vpop.permute.xlu1 %1649 }
0x104a   :  { %2854 = vmatprep.subr.mxu0 %v3116_v2  ;;  %2848 = vmatmul.mubr.msk.f32.vlgmr.msra.gmra.mxu1 %vm82_vm1, %v1650_v15 }
0x104b   :  { %2855 = vmatpush3.msra.mxu0 %v3638_v6  ;;  %2862 = vmatpush3.msra.mxu1 %v3264_v29 }
0x104c   :  { %2856 = vmatprep.subr.mxu0 %v3116_v2  ;;  %2863 = vmatprep.subr.mxu1 %v3116_v2 }
0x104d   :  { %2857 = vmatpush3.msra.mxu0 %v3647_v12  ;;  %2864 = vmatpush3.msra.mxu1 %v3269_v30 }
0x104e   :  { %2859 = vmatmul.mubr.msk.f32.vlgmr.msra.gmra.mxu0 %vm82_vm1, %v1650_v15  ;;  %2865 = vmatprep.subr.mxu1 %v3116_v2  ;;  %v3093_v15 = vld [vmem:[%s3894_s6] ss:$0 sm:$0xff] }
0x104f   :  { %2866 = vmatpush3.msra.mxu1 %v3277_v31  ;;  %2872 = vmatprep.subr.mxu0 %v3116_v2  ;;  %v3673_v31 = vld [vmem:[%s3889_s1] ss:$0 sm:$0xff] }
0x1050   :  { %2867 = vmatprep.subr.mxu1 %v3116_v2  ;;  %2873 = vmatpush3.msra.mxu0 %v3298_v34 }
0x1051   :  { %2868 = vmatpush3.msra.mxu1 %v3286_v32  ;;  %2874 = vmatprep.subr.mxu0 %v3116_v2 }
0x1052   :  { %2869 = vmatprep.mubr.msk.f32.mxu1 %vm3117_vm0, %v3116_v2  ;;  %2875 = vmatpush3.msra.mxu0 %v3308_v35  ;;  %v1750_v29 = vpop.permute.xlu0 %1749 }
0x1053   :  { %2883 = vmatprep.subr.mxu1 %v3116_v2  ;;  %2876 = vmatprep.subr.mxu0 %v3116_v2  ;;  %v1752_v32 = vmul.f32 %v3673_v31, %v1750_v29 }
0x1054   :  { %2877 = vmatpush3.msra.mxu0 %v3317_v37  ;;  %2880 = vmatprep.mubr.msk.f32.mxu0 %vm3117_vm0, %v3116_v2 }
0x1055   :  { %2878 = vmatprep.subr.mxu0 %v3116_v2 }
0x1056   :  { %2879 = vmatpush3.msra.mxu0 %v3326_v38  ;;  %v3680_v38 = vld [vmem:[%s3890_s2] ss:$0 sm:$0xff] }
0x1057   :  { %2894 = vmatprep.subr.mxu0 %v3116_v2  ;;  %v1753_v17 = vadd.f32 %v3680_v38, %v1752_v32 }
0x1106   :  { %v1644_v30 = vpop.f32.mrf.mxu0 }
0x1107   :  { %v1645_v35 = vadd.f32 %v3363_v46, %v1644_v30 }
0x1108   :  { %v2838_v34 = vpop.f32.mrf.mxu0 }
0x110a   :  { %v1719_v37 = vpop.f32.mrf.mxu1 }
0x110b   :  { %v1723_v16 = vadd.f32 %v1719_v37, %v1645_v35 }
0x110c   :  { %v2849_v21 = vpop.f32.mrf.mxu1 }
0x110d   :  { %3038 = vtanh.f32 %v1723_v16  ;;  %v2485_v46 = vmul.f32 -1.442695, %v1723_v16 }
0x110e   :  { %v1820_v1 = vpop.f32.mrf.mxu0 }
0x110f   :  { %v1824_v3 = vadd.f32 %v1820_v1, %v1753_v17 }
0x1110   :  { %v2860_v4 = vpop.f32.mrf.mxu0 }
0x1111   :  { %3040 = vtanh.f32 %v1824_v3  ;;  %v2487_v19 = vmul.f32 -1.442695, %v1824_v3 }
0x1112   :  { %3042 = vpow2.f32 %v2485_v46 }
0x1113   :  { %3044 = vpow2.f32 %v2487_v19 }
0x111a   :  { %v3039_v7 = vpop.eup %3038 }
0x111b   :  { %1733 = vrot.lane.b32.xlu1 %v3039_v7, %s3119_s28 }
0x111e   :  { %v3041_v8 = vpop.eup %3040 }
0x111f   :  { %1834 = vrot.lane.b32.xlu1 %v3041_v8, %s3119_s28  ;;  %v3043_v22 = vpop.eup %3042 }
0x1120   :  { %v1727_v24 = vadd.f32 1.0, %v3043_v22  ;;  %v3045_v25 = vpop.eup %3044 }
0x1121   :  { %v1828_v26 = vadd.f32 1.0, %v3045_v25 }
0x1122   :  { %3046 = vrcp.f32 %v1727_v24 }
0x1123   :  { %3048 = vrcp.f32 %v1828_v26 }
0x112f   :  { %v3047_v27 = vpop.eup %3046 }
0x1130   :  { %v3049_v39 = vpop.eup %3048  ;;  %v1731_v41 = vmul.f32 %v3047_v27, %v3597_v53 }
0x1131   :  { %v1832_v13 = vmul.f32 %v3049_v39, %v3601_v56  ;;  %v3086_v56 = vld [vmem:[%s3893_s5 + $0x10] sm:$0xff] }
0x118d   :  { %v1734_v28 = vpop.permute.xlu1 %1733 }
0x118e   :  { %v1736_v33 = vmul.f32 %v3047_v27, %v1734_v28 }
0x1190   :  { %1738 = vrot.lane.b32.xlu0 %v1736_v33, %s3119_s28 }
0x1191   :  { %v1835_v10 = vpop.permute.xlu1 %1834 }
0x1192   :  { %v1837_v40 = vmul.f32 %v3049_v39, %v1835_v10 }
0x1194   :  { %1839 = vrot.lane.b32.xlu1 %v1837_v40, %s3119_s28 }
0x1202   :  { %v1739_v42 = vpop.permute.xlu0 %1738 }
0x1203   :  { %v3688_v43 = vadd.f32 %v1739_v42, %v1731_v41 }
0x1205   :  { %3050 = vtanh.f32 %v3688_v43 }
0x1206   :  { %v1840_v44 = vpop.permute.xlu1 %1839 }
0x1207   :  { %v3692_v45 = vadd.f32 %v1840_v44, %v1832_v13 }
0x1209   :  { %3052 = vtanh.f32 %v3692_v45 }
0x1212   :  { %v3051_v47 = vpop.eup %3050 }
0x1213   :  { %1744 = vrot.lane.b32.xlu0 %v3051_v47, %s3119_s28 }
0x1216   :  { %v3053_v48 = vpop.eup %3052 }
0x1217   :  { %1845 = vrot.lane.b32.xlu1 %v3053_v48, %s3119_s28 }
0x1285   :  { %v1745_v50 = vpop.permute.xlu0 %1744 }
0x1286   :  { %v3697_v51 = vmul.f32 %v3047_v27, %v1745_v50 }
0x1288   :  { %1850 = vrot.lane.b32.xlu0 %v3697_v51, %s3121_s18 }
0x1289   :  { %v1846_v52 = vpop.permute.xlu1 %1845 }
0x128a   :  { %v1848_v53 = vmul.f32 %v3049_v39, %v1846_v52 }
0x128c   :  { %1925 = vrot.lane.b32.xlu1 %v1848_v53, %s3121_s18  ;;  %2025 = vperm.xlu0 %2937, %v3611_v0  }
0x1290   :  { %2949 = vset.pattern.permute.xlu0 %v3118_v5  ;;  %v3085_v5 = vld [vmem:[%s3893_s5 + $0x18] sm:$0xff] }
0x12fa   :  { %v1851_v54 = vpop.permute.xlu0 %1850 }
0x12fb   :  { %2870 = vmatmul.mubr.msk.f32.vlgmr.msra.gmra.mxu1 %vm82_vm1, %v1851_v54 }
0x12fc   :  { %2884 = vmatpush3.msra.mxu1 %v3621_v11  ;;  %2891 = vmatprep.mubr.msk.f32.mxu1 %vm3117_vm0, %v3116_v2 }
0x12fd   :  { %2885 = vmatprep.subr.mxu1 %v3116_v2 }
0x12fe   :  { %2886 = vmatpush3.msra.mxu1 %v3630_v14  ;;  %v1926_v55 = vpop.permute.xlu1 %1925 }
0x12ff   :  { %2887 = vmatprep.subr.mxu1 %v3116_v2  ;;  %2881 = vmatmul.mubr.msk.f32.vlgmr.msra.gmra.mxu0 %vm82_vm1, %v1926_v55 }
0x1300   :  { %2888 = vmatpush3.msra.mxu1 %v3638_v6  ;;  %2895 = vmatpush3.msra.mxu0 %v3085_v5 }
0x1301   :  { %2889 = vmatprep.subr.mxu1 %v3116_v2  ;;  %2896 = vmatprep.subr.mxu0 %v3116_v2 }
0x1302   :  { %2890 = vmatpush3.msra.mxu1 %v3647_v12  ;;  %2897 = vmatpush3.msra.mxu0 %v3086_v56 }
0x1303   :  { %2892 = vmatmul.mubr.msk.f32.vlgmr.msra.gmra.mxu1 %vm82_vm1, %v1926_v55  ;;  %2898 = vmatprep.subr.mxu0 %v3116_v2 }
0x1304   :  { %2905 = vmatprep.subr.mxu1 %v3116_v2  ;;  %2899 = vmatpush3.msra.mxu0 %v3087_v57 }
0x1305   :  { %2906 = vmatpush3.msra.mxu1 %v3088_v58  ;;  %2900 = vmatprep.subr.mxu0 %v3116_v2 }
0x1306   :  { %2907 = vmatprep.subr.mxu1 %v3116_v2  ;;  %2901 = vmatpush3.msra.mxu0 %v3089_v59  ;;  %v2938_v59 = vpack.i.bf16 %v3438_v23, %v3697_v51  ;;  %v2337_v23 = vld [vmem:[%s3895_s7 + $0x70] sm:$0xff]  ;;  %v2352_v51 = vld [vmem:[%s3895_s7 + $0xe8] sm:$0xff] }
0x1307   :  { %2902 = vmatprep.mubr.msk.f32.mxu0 %vm3117_vm0, %v3116_v2  ;;  %2908 = vmatpush3.msra.mxu1 %v3090_v60  ;;  %v2026_v63 = vpop.permute.xlu0 %2025 }
0x1308   :  { %2909 = vmatprep.subr.mxu1 %v3116_v2  ;;  %2913 = vmatprep.mubr.msk.f32.mxu1 %vm3117_vm0, %v3116_v2  ;;  %v2028_v11 = vmul.f32 %v3673_v31, %v2026_v63  ;;  %v2354_v63 = vld [vmem:[%s3895_s7 + $0xf8] sm:$0xff] }
0x1309   :  { %2910 = vmatpush3.msra.mxu1 %v3091_v61  ;;  %2617 = vmatprep.subr.mxu0 %v2354_v63 }
0x130a   :  { %2911 = vmatprep.subr.mxu1 %v3116_v2  ;;  %v2029_v30 = vadd.f32 %v3680_v38, %v2028_v11  ;;  %v2353_v11 = vld [vmem:[%s3895_s7 + $0xf0] sm:$0xff] }
0x130b   :  { %2912 = vmatpush3.msra.mxu1 %v3092_v62 }
0x13bb   :  { %v1920_v0 = vpop.f32.mrf.mxu1 }
0x13bc   :  { %v1921_v6 = vadd.f32 %v3093_v15, %v1920_v0  ;;  %v2338_v0 = vld [vmem:[%s3895_s7 + $0x78] sm:$0xff] }
0x13bd   :  { %v2871_v14 = vpop.f32.mrf.mxu1 }
0x13be   :  { %v2336_v14 = vld [vmem:[%s3895_s7 + $0x68] sm:$0xff] }
0x13bf   :  { %v1995_v12 = vpop.f32.mrf.mxu0 }
0x13c0   :  { %v1999_v29 = vadd.f32 %v1995_v12, %v1921_v6  ;;  %v2335_v6 = vld [vmem:[%s3895_s7 + $0x60] sm:$0xff]  ;;  %v2350_v12 = vld [vmem:[%s3895_s7 + $0xd8] sm:$0xff] }
0x13c1   :  { %v2882_v2 = vpop.f32.mrf.mxu0 }
0x13c2   :  { %3054 = vtanh.f32 %v1999_v29  ;;  %v2490_v16 = vmul.f32 -1.442695, %v1999_v29  ;;  %v2334_v29 = vld [vmem:[%s3895_s7 + $0x58] sm:$0xff]  ;;  %v2349_v2 = vld [vmem:[%s3895_s7 + $0xd0] sm:$0xff] }
0x13c3   :  { %v2096_v32 = vpop.f32.mrf.mxu1 }
0x13c4   :  { %v2100_v34 = vadd.f32 %v2096_v32, %v2029_v30  ;;  %v2333_v32 = vld [vmem:[%s3895_s7 + $0x50] sm:$0xff] }
0x13c5   :  { %v2893_v35 = vpop.f32.mrf.mxu1 }
0x13c6   :  { %3056 = vtanh.f32 %v2100_v34  ;;  %v2492_v17 = vmul.f32 -1.442695, %v2100_v34  ;;  %v2348_v34 = vld [vmem:[%s3895_s7 + $0xc8] sm:$0xff] }
0x13c7   :  { %3058 = vpow2.f32 %v2490_v16  ;;  %v2332_v35 = vld [vmem:[%s3895_s7 + $0x48] sm:$0xff]  ;;  %v2346_v16 = vld [vmem:[%s3895_s7 + $0xb8] sm:$0xff] }
0x13c8   :  { %3060 = vpow2.f32 %v2492_v17  ;;  %v2330_v17 = vld [vmem:[%s3895_s7 + $0x38] sm:$0xff] }
0x13cf   :  { %v3055_v37 = vpop.eup %3054 }
0x13d0   :  { %2009 = vrot.lane.b32.xlu1 %v3055_v37, %s3119_s28  ;;  %v2347_v37 = vld [vmem:[%s3895_s7 + $0xc0] sm:$0xff] }
0x13d3   :  { %v3057_v31 = vpop.eup %3056 }
0x13d4   :  { %2110 = vrot.lane.b32.xlu1 %v3057_v31, %s3119_s28  ;;  %v3059_v21 = vpop.eup %3058  ;;  %v2331_v31 = vld [vmem:[%s3895_s7 + $0x40] sm:$0xff] }
0x13d5   :  { %v2003_v1 = vadd.f32 1.0, %v3059_v21  ;;  %v3061_v3 = vpop.eup %3060  ;;  %v2345_v21 = vld [vmem:[%s3895_s7 + $0xb0] sm:$0xff] }
0x13d6   :  { %v2104_v38 = vadd.f32 1.0, %v3061_v3  ;;  %v2344_v3 = vld [vmem:[%s3895_s7 + $0xa8] sm:$0xff] }
0x13d7   :  { %3062 = vrcp.f32 %v2003_v1  ;;  %v2329_v1 = vld [vmem:[%s3895_s7 + $0x30] sm:$0xff] }
0x13d8   :  { %3064 = vrcp.f32 %v2104_v38  ;;  %v2328_v38 = vld [vmem:[%s3895_s7 + $0x28] sm:$0xff] }
0x13e4   :  { %v3063_v4 = vpop.eup %3062 }
0x13e5   :  { %v3065_v46 = vpop.eup %3064  ;;  %v2007_v24 = vmul.f32 %v3063_v4, %v3688_v43 }
0x13e6   :  { %v2108_v27 = vmul.f32 %v3065_v46, %v3692_v45 }
0x1442   :  { %v2010_v7 = vpop.permute.xlu1 %2009 }
0x1443   :  { %v2012_v8 = vmul.f32 %v3063_v4, %v2010_v7  ;;  %v2327_v7 = vld [vmem:[%s3895_s7 + $0x20] sm:$0xff] }
0x1445   :  { %2014 = vrot.lane.b32.xlu0 %v2012_v8, %s3119_s28  ;;  %v2342_v8 = vld [vmem:[%s3895_s7 + $0x98] sm:$0xff] }
0x1446   :  { %v2111_v19 = vpop.permute.xlu1 %2110 }
0x1447   :  { %v2113_v22 = vmul.f32 %v3065_v46, %v2111_v19  ;;  %v2341_v19 = vld [vmem:[%s3895_s7 + $0x90] sm:$0xff] }
0x1449   :  { %2115 = vrot.lane.b32.xlu1 %v2113_v22, %s3119_s28  ;;  %v2325_v22 = vld [vmem:[%s3895_s7 + $0x10] sm:$0xff] }
0x14b7   :  { %v2015_v25 = vpop.permute.xlu0 %2014 }
0x14b8   :  { %v2017_v26 = vadd.f32 %v2015_v25, %v2007_v24  ;;  %v2340_v24 = vld [vmem:[%s3895_s7 + $0x88] sm:$0xff] }
0x14b9   :  { %v2324_v25 = vld [vmem:[%s3895_s7 + $0x8] sm:$0xff] }
0x14ba   :  { %3066 = vtanh.f32 %v2017_v26 }
0x14bb   :  { %v2116_v28 = vpop.permute.xlu1 %2115 }
0x14bc   :  { %v2118_v33 = vadd.f32 %v2116_v28, %v2108_v27  ;;  %v2323_v27 = vld [vmem:[%s3895_s7] sm:$0xff] }
0x14bd   :  { %v2496_v28 = vld [vmem:[#allocation2] ss:$0 sm:$0xff] }
0x14be   :  { %3068 = vtanh.f32 %v2118_v33 }
0x14c7   :  { %v3067_v39 = vpop.eup %3066 }
0x14c8   :  { %2020 = vrot.lane.b32.xlu0 %v3067_v39, %s3119_s28 }
0x14cb   :  { %v3069_v10 = vpop.eup %3068 }
0x14cc   :  { %2121 = vrot.lane.b32.xlu1 %v3069_v10, %s3119_s28 }
0x153a   :  { %v2021_v40 = vpop.permute.xlu0 %2020 }
0x153b   :  { %v3764_v41 = vmul.f32 %v3063_v4, %v2021_v40  ;;  %v2343_v4 = vld [vmem:[%s3895_s7 + $0xa0] sm:$0xff] }
0x153d   :  { %2126 = vrot.lane.b32.xlu0 %v3764_v41, %s3121_s18 }
0x153e   :  { %v2122_v42 = vpop.permute.xlu1 %2121 }
0x153f   :  { %v2124_v43 = vmul.f32 %v3065_v46, %v2122_v42  ;;  %v2326_v46 = vld [vmem:[%s3895_s7 + $0x18] sm:$0xff] }
0x1541   :  { %2201 = vrot.lane.b32.xlu1 %v2124_v43, %s3121_s18 }
0x15af   :  { %v2127_v13 = vpop.permute.xlu0 %2126 }
0x15b0   :  { %2903 = vmatmul.mubr.msk.f32.vlgmr.msra.gmra.mxu0 %vm82_vm1, %v2127_v13 }
0x15b1   :  { %2618 = vmatpush3.msra.mxu0 %v2338_v0 }
0x15b2   :  { %2619 = vmatprep.subr.mxu0 %v2353_v11 }
0x15b3   :  { %v2202_v44 = vpop.permute.xlu1 %2201  ;;  %2620 = vmatpush3.msra.mxu0 %v2337_v23 }
0x15b4   :  { %2914 = vmatmul.mubr.msk.f32.vlgmr.msra.gmra.mxu1 %vm82_vm1, %v2202_v44  ;;  %2621 = vmatprep.subr.mxu0 %v2352_v51 }
0x15b5   :  { %2622 = vmatpush3.msra.mxu0 %v2336_v14 }
0x1670   :  { %v2196_v45 = vpop.f32.mrf.mxu0 }
0x1671   :  { %v2197_v48 = vadd.f32 %v3093_v15, %v2196_v45  ;;  %v2351_v15 = vld [vmem:[%s3895_s7 + $0xe0] sm:$0xff] }
0x1672   :  { %v2904_v47 = vpop.f32.mrf.mxu0  ;;  %2623 = vmatprep.subr.mxu0 %v2351_v15 }
0x1673   :  { %2624 = vmatpush3.msra.mxu0 %v2335_v6 }
0x1674   :  { %v2271_v49 = vpop.f32.mrf.mxu1  ;;  %2625 = vmatprep.subr.mxu0 %v2350_v12 }
0x1675   :  { %v2275_v50 = vadd.f32 %v2271_v49, %v2197_v48  ;;  %2626 = vmatpush3.msra.mxu0 %v2334_v29 }
0x1676   :  { %v2915_v52 = vpop.f32.mrf.mxu1  ;;  %2627 = vmatprep.subr.mxu0 %v2349_v2 }
0x1677   :  { %3070 = vtanh.f32 %v2275_v50  ;;  %v2495_v54 = vmul.f32 -1.442695, %v2275_v50  ;;  %2628 = vmatpush3.msra.mxu0 %v2333_v32 }
0x1678   :  { %2629 = vmatprep.subr.mxu0 %v2348_v34 }
0x1679   :  { %3072 = vpow2.f32 %v2495_v54  ;;  %2630 = vmatpush3.msra.mxu0 %v2332_v35 }
0x167a   :  { %2631 = vmatprep.subr.mxu0 %v2347_v37 }
0x167b   :  { %2632 = vmatpush3.msra.mxu0 %v2331_v31 }
0x167c   :  { %2633 = vmatprep.subr.mxu0 %v2346_v16 }
0x167d   :  { %2634 = vmatpush3.msra.mxu0 %v2330_v17 }
0x167e   :  { %2635 = vmatprep.subr.mxu0 %v2345_v21 }
0x167f   :  { %2636 = vmatpush3.msra.mxu0 %v2329_v1 }
0x1680   :  { %2637 = vmatprep.subr.mxu0 %v2344_v3 }
0x1681   :  { %2638 = vmatpush3.msra.mxu0 %v2328_v38 }
0x1682   :  { %2639 = vmatprep.subr.mxu0 %v2343_v4 }
0x1683   :  { %2640 = vmatpush3.msra.mxu0 %v2327_v7 }
0x1684   :  { %v3071_v53 = vpop.eup %3070  ;;  %2641 = vmatprep.subr.mxu0 %v2342_v8 }
0x1685   :  { %2285 = vrot.lane.b32.xlu0 %v3071_v53, %s3119_s28  ;;  %2642 = vmatpush3.msra.mxu0 %v2326_v46 }
0x1686   :  { %v3073_v55 = vpop.eup %3072  ;;  %2643 = vmatprep.subr.mxu0 %v2341_v19 }
0x1687   :  { %v2279_v5 = vadd.f32 1.0, %v3073_v55  ;;  %2644 = vmatpush3.msra.mxu0 %v2325_v22 }
0x1688   :  { %2645 = vmatprep.subr.mxu0 %v2340_v24 }
0x1689   :  { %3074 = vrcp.f32 %v2279_v5  ;;  %2646 = vmatpush3.msra.mxu0 %v2324_v25 }
0x1696   :  { %v3772_v56 = vpop.eup %3074 }
0x1697   :  { %v2283_v60 = vmul.f32 %v3772_v56, %v2017_v26  ;;  %v2339_v26 = vld [vmem:[%s3895_s7 + $0x80] sm:$0xff]  ;;  %s3129_s7 = smov [#allocation3]  }
0x1698   :  { %2647 = vmatprep.subr.mxu0 %v2339_v26 }
0x1699   :  { %2648 = vmatpush3.msra.mxu0 %v2323_v27 }
0x16f7   :  { %v2286_v57 = vpop.permute.xlu0 %2285 }
0x16f8   :  { %v2288_v58 = vmul.f32 %v3772_v56, %v2286_v57 }
0x16fa   :  { %2290 = vrot.lane.b32.xlu1 %v2288_v58, %s3119_s28 }
0x16fe   :  { %2939 = vrot.lane.b32.xlu1 %v2938_v59, %s3128_s4 }
0x1702   :  { %2362 = vperm.xlu1 %2948, %v2496_v28  }
0x176c   :  { %v2291_v61 = vpop.permute.xlu1 %2290 }
0x176d   :  { %v2293_v62 = vadd.f32 %v2291_v61, %v2283_v60 }
0x176f   :  { %3076 = vtanh.f32 %v2293_v62 }
0x1770   :  { %v2940_v40 = vpop.permute.xlu1 %2939 }
0x1771   :  { %v2942_v42 = vunpack.i.h.bf16 %v2940_v40  ;;  %v2941_v43 = vunpack.i.l.bf16 %v2940_v40 }
0x1773   :  { %v2315_v13 = vsel %vm82_vm1, %v3385_v36, %v2942_v42  ;;  %v2320_v44 = vsel %vm82_vm1, %v3614_v9, %v2941_v43 }
0x1774   :  { %v2321_v49 = vsel %vm2316_vm2, %v2320_v44, %v3764_v41 }
0x177c   :  { %v3077_v30 = vpop.eup %3076 }
0x177d   :  { %2296 = vrot.lane.b32.xlu0 %v3077_v30, %s3119_s28  ;;  %v2363_v55 = vpop.permute.xlu1 %2362 }
0x17ef   :  { %v2297_v33 = vpop.permute.xlu0 %2296 }
0x17f0   :  { %v2299_v39 = vmul.f32 %v3772_v56, %v2297_v33 }
0x17f2   :  { %v2943_v10 = vpack.i.bf16 %v3550_v18, %v2299_v39  ;;  %v2317_v18 = vsel %vm2316_vm2, %v2315_v13, %v3494_v20 }
0x17f4   :  { %2944 = vrot.lane.b32.xlu0 %v2943_v10, %s3119_s28  ;;  %s2443_s28 = sshll.u32 %s3129_s7, 4  ;;  %s2444_s28 = int_to_ptr.vmem [resolvable:$true] %s2443_s28 }
0x17f5   :  { %s3094_s30 = scalar_lea.vmem %s2444_s28, 128  ;;  %p3099_p1 = scmp.lt.s32.totalorder %s2444_s28, %s2444_s28 }
0x17f6   :  { %p3095_p0 = scmp.ne.s32.totalorder %s2444_s28, %s3094_s30  ;;  %p3100_p2 = scmp.lt.s32.totalorder %s3094_s30, %s3094_s30 }
0x17f8   :  { %p3101_p3 = por %p3100_p2, %p3099_p1 }
0x17fa   :  { %p3102_p4 = pnand %p3101_p3, %p3095_p0 }
0x1866   :  { %v2945_v45 = vpop.permute.xlu0 %2944 }
0x1867   :  { %v2947_v47 = vunpack.i.h.bf16 %v2945_v45  ;;  %v2946_v48 = vunpack.i.l.bf16 %v2945_v45 }
0x1869   :  { %v2322_v50 = vsel %vm2318_vm3, %v2321_v49, %v2946_v48  ;;  %v2319_v52 = vsel %vm2318_vm3, %v2317_v18, %v2947_v47 }
0x186a   :  { %2429 = vmatprep.mubr.f32.mxu0 %v2322_v50 }
0x186b   :  { %2430 = vmatmul.mubr.f32.vlgmr.msra.gmra.mxu0 %v2319_v52 }
0x192b   :  { %v2649_v53 = vpop.f32.mrf.mxu0 }
0x192d   :  { %v2650_v54 = vpop.f32.mrf.mxu0 }
0x192e   :  { %v2651_v36 = vadd.f32 %v2650_v54, %v2649_v53 }
0x1930   :  { %v2432_v9 = vadd.f32 %v2651_v36, %v2363_v55 }
0x1932   :  { %2436 = vst.msk [vmem:[#allocation3] sm:$0xff] %vm2435_vm4, %v2432_v9 }
0x1933   :  { %3105 = shalt.err (!%p3102_p4)
}
0x1934   :  { %2446 = dma.vmem_to_hbm [thread:$0]  %s2444_s28, 128, %s3899_s11, [#allocation4]  }
0x1935   :  { %3114 = dma.done.wait [#allocation4], 128  }
0x1936   :  { %3115 = vsyncadd [#allocation4], 4294967168 }
0x1937   :  { %2450 = vsyncpa [#allocation4], 1 }

</bundles_post_ra>
